<compile_context>
chip_gen: v7x
topology: tpu7x:2x2x1
jax: 0.10.0
libtpu: 0.0.40
codegen_flags: <defaults>
</compile_context>

<pallas_src>
import functools

import jax
import jax.numpy as jnp
from jax.experimental import pallas as pl
from jax.experimental.pallas import tpu as pltpu

# `Distribution` is an undefined global in the reference module; pick a small size.
DISTRIBUTION = 16
D_PAD = 128          # lane-dense padded output width
HIDDEN_IN = 1024     # 512 (img CLS) + 512 (text CLS)
HIDDEN_MID = 512
C_HALF = HIDDEN_IN // 2
_PALLAS_MIN_BATCH = 256   # below this, a plain fused XLA dot is at least as fast


def ccfusion_kernel(ximg_ref, xtxt_ref, w1a_ref, w1b_ref, b1_ref,
                    w2_ref, b2_ref, out_ref):
    # Linear(1024, 512): split-K over the two concatenated CLS halves
    # (dot(cat(a,b), W) == dot(a, W[:512]) + dot(b, W[512:])).  Written as an
    # accumulation so v7x's MRB can accumulate in place (f32 acc on the MXU).
    h = jnp.dot(ximg_ref[...], w1a_ref[...], preferred_element_type=jnp.float32)
    h += jnp.dot(xtxt_ref[...], w1b_ref[...], preferred_element_type=jnp.float32)
    h = jnp.maximum(h + b1_ref[...], 0.0)                  # bias + ReLU in f32

    # Linear(512, Distribution) padded to 128 output lanes (padded cols of w2/b2 are 0).
    o = jnp.dot(h.astype(jnp.bfloat16), w2_ref[...],
                preferred_element_type=jnp.float32)
    o = jnp.maximum(o + b2_ref[...], 0.0)

    # TODO(synk): `distribution_normalize` is undefined in the reference source;
    # implemented as L1 normalization (outputs are non-negative after ReLU).
    # Padded lanes are exactly zero so they do not perturb the row sum; exact
    # divide keeps row sums == 1 (s is only (tile_b, 1) — negligible cost).
    s = jnp.sum(o, axis=-1, keepdims=True)
    out_ref[...] = o / (s + 1e-12)


def _round_up(x, m):
    return ((x + m - 1) // m) * m


def _choose_tile_b(batch):
    """Batch tile for the grid.

    Capped at 512 rows (measured ~85% of HBM roofline on v6e vs 63% at 256;
    keeps total VMEM (~7 MiB incl. double buffers) well under v5e's 16 MiB
    default scoped limit).  Shrinks while that would leave fewer than 4 grid
    steps so dual-TC chips (v7x) get >= 2 steps per core and the input DMA
    pipeline has work to overlap.  The pl.cdiv grid handles ragged tails.
    """
    if batch <= 8:
        return batch                       # block == full array dim (always allowed)
    tile = min(512, _round_up(batch, 8))
    while tile >= 256 and pl.cdiv(batch, tile) < 4:
        tile //= 2
    if tile > batch:
        tile = batch                       # single full-dim block for odd small batches
    return tile


def make_params(key):
    """PyTorch-style uniform(+/-1/sqrt(fan_in)) init. NOTE: weights are stored
    (in, out) for x @ W; a real nn.Linear checkpoint ((out, in)) must be transposed."""
    k1, k2, k3, k4 = jax.random.split(key, 4)
    bound1 = 1.0 / (HIDDEN_IN ** 0.5)
    bound2 = 1.0 / (HIDDEN_MID ** 0.5)
    w1 = jax.random.uniform(k1, (HIDDEN_IN, HIDDEN_MID), jnp.float32, -bound1, bound1)
    b1 = jax.random.uniform(k2, (1, HIDDEN_MID), jnp.float32, -bound1, bound1)
    w2 = jax.random.uniform(k3, (HIDDEN_MID, DISTRIBUTION), jnp.float32, -bound2, bound2)
    b2 = jax.random.uniform(k4, (1, DISTRIBUTION), jnp.float32, -bound2, bound2)
    return w1, b1, w2, b2


def prepare_params(params):
    """One-time kernel-side weight prep: bf16 split-K halves of the first Linear
    and a lane-padded (128-wide) second Linear. Call ONCE and cache the result
    alongside the parameters — do NOT re-run per forward step."""
    w1, b1, w2, b2 = params
    w1a = w1[:C_HALF].astype(jnp.bfloat16)
    w1b = w1[C_HALF:].astype(jnp.bfloat16)
    b1f = b1.reshape(1, HIDDEN_MID).astype(jnp.float32)
    w2p = jnp.zeros((HIDDEN_MID, D_PAD), jnp.bfloat16).at[:, :DISTRIBUTION].set(
        w2.astype(jnp.bfloat16))
    b2p = jnp.zeros((1, D_PAD), jnp.float32).at[:, :DISTRIBUTION].set(
        b2.astype(jnp.float32))
    return w1a, w1b, b1f, w2p, b2p


def _xla_forward(x_img, x_txt, prepped):
    """Plain fused-XLA path for tiny batches (MXU M-fill / launch overhead dominate)."""
    w1a, w1b, b1f, w2p, b2p = prepped
    h = (jnp.dot(x_img, w1a, preferred_element_type=jnp.float32)
         + jnp.dot(x_txt, w1b, preferred_element_type=jnp.float32))
    h = jnp.maximum(h + b1f, 0.0)
    o = jnp.dot(h.astype(jnp.bfloat16), w2p, preferred_element_type=jnp.float32)
    o = jnp.maximum(o + b2p, 0.0)
    s = jnp.sum(o, axis=-1, keepdims=True)
    return o / (s + 1e-12)


def _pallas_forward(x_img, x_txt, prepped):
    w1a, w1b, b1f, w2p, b2p = prepped
    B = x_img.shape[0]
    tile_b = _choose_tile_b(B)
    grid = (pl.cdiv(B, tile_b),)

    bytes_accessed = (
        2 * B * C_HALF * 2                 # x_img + x_txt (bf16)
        + 2 * C_HALF * HIDDEN_MID * 2      # w1a + w1b (bf16)
        + HIDDEN_MID * D_PAD * 2           # w2 (bf16)
        + HIDDEN_MID * 4 + D_PAD * 4       # biases (f32)
        + B * D_PAD * 4                    # output (f32)
    )
    cost = pl.CostEstimate(
        flops=2 * B * HIDDEN_IN * HIDDEN_MID + 2 * B * HIDDEN_MID * D_PAD,
        transcendentals=0,
        bytes_accessed=bytes_accessed,
    )

    batch_map = lambda i: (i, 0)
    const_map = lambda i: (0, 0)   # weights/bias: same block every step -> VMEM-resident

    return pl.pallas_call(
        ccfusion_kernel,
        out_shape=jax.ShapeDtypeStruct((B, D_PAD), jnp.float32),
        grid=grid,
        in_specs=[
            pl.BlockSpec((tile_b, C_HALF), batch_map),        # x_img CLS (bf16)
            pl.BlockSpec((tile_b, C_HALF), batch_map),        # x_txt CLS (bf16)
            pl.BlockSpec((C_HALF, HIDDEN_MID), const_map),    # w1a
            pl.BlockSpec((C_HALF, HIDDEN_MID), const_map),    # w1b
            pl.BlockSpec((1, HIDDEN_MID), const_map),         # b1
            pl.BlockSpec((HIDDEN_MID, D_PAD), const_map),     # w2 (padded)
            pl.BlockSpec((1, D_PAD), const_map),              # b2 (padded)
        ],
        out_specs=pl.BlockSpec((tile_b, D_PAD), batch_map),
        compiler_params=pltpu.CompilerParams(
            dimension_semantics=("parallel",),
            # Let XLA fuse the wrapper-side CLS slice + f32->bf16 cast directly
            # into the two activation operands (no separate HBM round trip).
            allow_input_fusion=[True, True, False, False, False, False, False],
        ),
        cost_estimate=cost,
    )(x_img, x_txt, w1a, w1b, b1f, w2p, b2p)


def ccfusion_forward(img_feature, text_feature, ground_truth, prepped_params,
                     *, use_pallas=None):
    """Mirrors CCFusion.forward: returns (output, None)."""
    del ground_truth  # unused by the reference forward
    B = img_feature.shape[0]

    # CLS tokens as two (B, 512) bf16 operands; with allow_input_fusion these
    # fuse into the pallas_call operands, so no (B, 1024) concat (and no extra
    # standalone slice fusion) is materialized.
    x_img = img_feature[:, 0].astype(jnp.bfloat16)
    x_txt = text_feature[:, 0].astype(jnp.bfloat16)

    if use_pallas is None:
        use_pallas = B >= _PALLAS_MIN_BATCH
    if use_pallas:
        out = _pallas_forward(x_img, x_txt, prepped_params)
    else:
        out = _xla_forward(x_img, x_txt, prepped_params)
    return out[:, :DISTRIBUTION], None


if __name__ == "__main__":
    key = jax.random.PRNGKey(0)
    k_img, k_txt, k_par = jax.random.split(key, 3)

    B, S, C = 2, 8, 512
    img_feature = jax.random.normal(k_img, (B, S, C), jnp.float32)
    text_feature = jax.random.normal(k_txt, (B, S, C), jnp.float32)
    ground_truth = None

    params = make_params(k_par)
    prepped = prepare_params(params)   # one-time weight prep, cached with params

    # Force the Pallas path so the kernel is exercised even at this tiny demo
    # batch (the dispatcher would otherwise route B=2 to the XLA path).
    fwd = jax.jit(functools.partial(ccfusion_forward, use_pallas=True))
    output, _ = fwd(img_feature, text_feature, ground_truth, prepped)
    output = jax.block_until_ready(output)

    assert output.shape == (B, DISTRIBUTION)
    assert bool(jnp.all(jnp.isfinite(output)))
    # Rows should sum to ~1 (or 0 if everything was ReLU'd away).
    row_sums = jnp.sum(output, axis=-1)
    assert bool(jnp.all((jnp.abs(row_sums - 1.0) < 1e-3) | (row_sums == 0.0)))

    # Cross-check against the plain fused-XLA reference path (same bf16 weights).
    ref_out, _ = jax.jit(functools.partial(ccfusion_forward, use_pallas=False))(
        img_feature, text_feature, ground_truth, prepped)
    assert bool(jnp.allclose(output, ref_out, atol=2e-3, rtol=2e-3))

    print("KERNEL_OK")
</pallas_src>

<mosaic_0001>
module attributes {stable_mosaic.version = 11 : i64} {
  func.func @ccfusion_kernel(%arg0: i32, %arg1: memref<2x512xbf16, #tpu.memory_space<vmem>>, %arg2: memref<2x512xbf16, #tpu.memory_space<vmem>>, %arg3: memref<512x512xbf16, #tpu.memory_space<vmem>>, %arg4: memref<512x512xbf16, #tpu.memory_space<vmem>>, %arg5: memref<1x512xf32, #tpu.memory_space<vmem>>, %arg6: memref<512x128xbf16, #tpu.memory_space<vmem>>, %arg7: memref<1x128xf32, #tpu.memory_space<vmem>>, %arg8: memref<2x128xf32, #tpu.memory_space<vmem>>) attributes {dimension_semantics = [#tpu.dimension_semantics<parallel>], iteration_bounds = array<i64: 1>, scalar_prefetch = 0 : i64, scratch_operands = 0 : i64, tpu.core_type = #tpu.core_type<tc>, window_params = [{transform_indices = @transform_0, window_bounds = array<i64: 2, 512>}, {transform_indices = @transform_1, window_bounds = array<i64: 2, 512>}, {pipeline_mode = #tpu.pipeline_mode<synchronous>, transform_indices = @transform_2, window_bounds = array<i64: 512, 512>}, {pipeline_mode = #tpu.pipeline_mode<synchronous>, transform_indices = @transform_3, window_bounds = array<i64: 512, 512>}, {pipeline_mode = #tpu.pipeline_mode<synchronous>, transform_indices = @transform_4, window_bounds = array<i64: 1, 512>}, {pipeline_mode = #tpu.pipeline_mode<synchronous>, transform_indices = @transform_5, window_bounds = array<i64: 512, 128>}, {pipeline_mode = #tpu.pipeline_mode<synchronous>, transform_indices = @transform_6, window_bounds = array<i64: 1, 128>}, {transform_indices = @transform_7, window_bounds = array<i64: 2, 128>}]} {
    %c0 = arith.constant 0 : index
    %c0_0 = arith.constant 0 : index
    %0 = vector.load %arg1[%c0, %c0_0] : memref<2x512xbf16, #tpu.memory_space<vmem>>, vector<2x512xbf16>
    %c0_1 = arith.constant 0 : index
    %c0_2 = arith.constant 0 : index
    %1 = vector.load %arg3[%c0_1, %c0_2] : memref<512x512xbf16, #tpu.memory_space<vmem>>, vector<512x512xbf16>
    %cst = arith.constant dense<0.000000e+00> : vector<2x512xf32>
    %2 = tpu.matmul %0, %1, %cst {dimension_numbers = #tpu.dot_dimension_numbers<[1], [0], [0], [1], [0, 0, 1, 1], [], []>} : vector<2x512xbf16>, vector<512x512xbf16>, vector<2x512xf32> -> vector<2x512xf32>
    %c0_3 = arith.constant 0 : index
    %c0_4 = arith.constant 0 : index
    %3 = vector.load %arg2[%c0_3, %c0_4] : memref<2x512xbf16, #tpu.memory_space<vmem>>, vector<2x512xbf16>
    %c0_5 = arith.constant 0 : index
    %c0_6 = arith.constant 0 : index
    %4 = vector.load %arg4[%c0_5, %c0_6] : memref<512x512xbf16, #tpu.memory_space<vmem>>, vector<512x512xbf16>
    %cst_7 = arith.constant dense<0.000000e+00> : vector<2x512xf32>
    %5 = tpu.matmul %3, %4, %cst_7 {dimension_numbers = #tpu.dot_dimension_numbers<[1], [0], [0], [1], [0, 0, 1, 1], [], []>} : vector<2x512xbf16>, vector<512x512xbf16>, vector<2x512xf32> -> vector<2x512xf32>
    %6 = arith.addf %2, %5 : vector<2x512xf32>
    %c0_8 = arith.constant 0 : index
    %c0_9 = arith.constant 0 : index
    %7 = vector.load %arg5[%c0_8, %c0_9] : memref<1x512xf32, #tpu.memory_space<vmem>>, vector<1x512xf32>
    %8 = vector.broadcast %7 : vector<1x512xf32> to vector<2x512xf32>
    %9 = arith.addf %6, %8 : vector<2x512xf32>
    %cst_10 = arith.constant 0.000000e+00 : f32
    %10 = vector.broadcast %cst_10 : f32 to vector<2x512xf32>
    %11 = arith.maximumf %9, %10 : vector<2x512xf32>
    %12 = arith.truncf %11 : vector<2x512xf32> to vector<2x512xbf16>
    %c0_11 = arith.constant 0 : index
    %c0_12 = arith.constant 0 : index
    %13 = vector.load %arg6[%c0_11, %c0_12] : memref<512x128xbf16, #tpu.memory_space<vmem>>, vector<512x128xbf16>
    %cst_13 = arith.constant dense<0.000000e+00> : vector<2x128xf32>
    %14 = tpu.matmul %12, %13, %cst_13 {dimension_numbers = #tpu.dot_dimension_numbers<[1], [0], [0], [1], [0, 0, 1, 1], [], []>} : vector<2x512xbf16>, vector<512x128xbf16>, vector<2x128xf32> -> vector<2x128xf32>
    %c0_14 = arith.constant 0 : index
    %c0_15 = arith.constant 0 : index
    %15 = vector.load %arg7[%c0_14, %c0_15] : memref<1x128xf32, #tpu.memory_space<vmem>>, vector<1x128xf32>
    %16 = vector.broadcast %15 : vector<1x128xf32> to vector<2x128xf32>
    %17 = arith.addf %14, %16 : vector<2x128xf32>
    %cst_16 = arith.constant 0.000000e+00 : f32
    %18 = vector.broadcast %cst_16 : f32 to vector<2x128xf32>
    %19 = arith.maximumf %17, %18 : vector<2x128xf32>
    %cst_17 = arith.constant dense<0.000000e+00> : vector<2xf32>
    %20 = vector.multi_reduction <add>, %19, %cst_17 [1] : vector<2x128xf32> to vector<2xf32>
    %21 = vector.shape_cast %20 : vector<2xf32> to vector<2x1xf32>
    %cst_18 = arith.constant 9.99999996E-13 : f32
    %22 = vector.broadcast %cst_18 : f32 to vector<2x1xf32>
    %23 = arith.addf %21, %22 : vector<2x1xf32>
    %24 = vector.broadcast %23 : vector<2x1xf32> to vector<2x128xf32>
    %25 = arith.divf %19, %24 : vector<2x128xf32>
    %c0_19 = arith.constant 0 : index
    %c0_20 = arith.constant 0 : index
    %26 = vector.load %arg8[%c0_19, %c0_20] : memref<2x128xf32, #tpu.memory_space<vmem>>, vector<2x128xf32>
    tpu.vector_store %arg8[%c0_19, %c0_20], %25 {strides = array<i32>} : memref<2x128xf32, #tpu.memory_space<vmem>>, vector<2x128xf32>,
    return
  }
  func.func @transform_0(%arg0: i32) -> (i32, i32) {
    %c0_i32 = arith.constant 0 : i32
    %c0_i32_0 = arith.constant 0 : i32
    return %arg0, %c0_i32 : i32, i32
  }
  func.func @transform_1(%arg0: i32) -> (i32, i32) {
    %c0_i32 = arith.constant 0 : i32
    %c0_i32_0 = arith.constant 0 : i32
    return %arg0, %c0_i32 : i32, i32
  }
  func.func @transform_2(%arg0: i32) -> (i32, i32) {
    %c0_i32 = arith.constant 0 : i32
    %c0_i32_0 = arith.constant 0 : i32
    %c0_i32_1 = arith.constant 0 : i32
    return %c0_i32, %c0_i32_0 : i32, i32
  }
  func.func @transform_3(%arg0: i32) -> (i32, i32) {
    %c0_i32 = arith.constant 0 : i32
    %c0_i32_0 = arith.constant 0 : i32
    %c0_i32_1 = arith.constant 0 : i32
    return %c0_i32, %c0_i32_0 : i32, i32
  }
  func.func @transform_4(%arg0: i32) -> (i32, i32) {
    %c0_i32 = arith.constant 0 : i32
    %c0_i32_0 = arith.constant 0 : i32
    %c0_i32_1 = arith.constant 0 : i32
    return %c0_i32, %c0_i32_0 : i32, i32
  }
  func.func @transform_5(%arg0: i32) -> (i32, i32) {
    %c0_i32 = arith.constant 0 : i32
    %c0_i32_0 = arith.constant 0 : i32
    %c0_i32_1 = arith.constant 0 : i32
    return %c0_i32, %c0_i32_0 : i32, i32
  }
  func.func @transform_6(%arg0: i32) -> (i32, i32) {
    %c0_i32 = arith.constant 0 : i32
    %c0_i32_0 = arith.constant 0 : i32
    %c0_i32_1 = arith.constant 0 : i32
    return %c0_i32, %c0_i32_0 : i32, i32
  }
  func.func @transform_7(%arg0: i32) -> (i32, i32) {
    %c0_i32 = arith.constant 0 : i32
    %c0_i32_0 = arith.constant 0 : i32
    return %arg0, %c0_i32 : i32, i32
  }
}

</mosaic_0001>

<bundles_post_ra>
// kernel: ccfusion_forward.2
= control target key start
LH: loop header
LB: loop body
LE: loop exit
PB: predicated region body
PF: predicated region fallthrough
CT: control target
= control target key end

     0   :  { %12 = vsyncpa [#allocation3], 0  ;;  %s3555_s0 = inlined_call_operand.hbm [shape: bf16[512,512], index: 0, kind: input, shape index: {}]   ;;  %s3556_s1 = inlined_call_operand.hbm [shape: bf16[512,512], index: 1, kind: input, shape index: {}]   ;;  %s3557_s2 = inlined_call_operand.vmem [shape: f32[1,512], index: 2, kind: input, shape index: {}]   ;;  %s3558_s3 = inlined_call_operand.hbm [shape: bf16[512,128], index: 3, kind: input, shape index: {}]   ;;  %s3559_s4 = inlined_call_operand.vmem [shape: f32[1,128], index: 4, kind: input, shape index: {}]   ;;  %s3560_s5 = inlined_call_operand.vmem [shape: bf16[2,1,512], index: 5, kind: input, shape index: {}]   ;;  %s3561_s6 = inlined_call_operand.vmem [shape: bf16[2,1,512], index: 6, kind: input, shape index: {}]   ;;  %s3562_s7 = inlined_call_operand.hbm [shape: f32[2,128], index: 7, kind: output, shape index: {}]  }
   0x1   :  { %13 = vsyncpa [#allocation6], 0 }
   0x2   :  { %14 = vsyncpa [#allocation4], 0  ;;  %s3358_s24 = smov [#allocation5]   ;;  %s3359_s26 = smov [#allocation2]  }
   0x3   :  { %s36_s25 = sshll.u32 %s3358_s24, 4  ;;  %s24_s27 = sshll.u32 %s3359_s26, 4  ;;  %s37_s25 = int_to_ptr.vmem [resolvable:$true] %s36_s25  ;;  %s3408_s27 = int_to_ptr.vmem [resolvable:$true] %s24_s27 }
   0x4   :  { %s3264_s30 = scalar_lea.hbm %s3556_s1, 16384 }
   0x5   :  { %p3265_p0 = scmp.ne.s32.totalorder %s3556_s1, %s3264_s30  ;;  %p3268_p1 = scmp.lt.u32.totalorder %s3264_s30, %s3556_s1 }
   0x7   :  { %p3270_p2 = pnand %p3268_p1, %p3265_p0 }
   0x9   :  { %3273 = shalt.err (!%p3270_p2)
}
   0xa   :  { %s3274_s12 = scalar_lea.vmem %s37_s25, 16384  ;;  %p3279_p4 = scmp.lt.s32.totalorder %s37_s25, %s37_s25 }
   0xb   :  { %p3275_p3 = scmp.ne.s32.totalorder %s37_s25, %s3274_s12  ;;  %p3280_p5 = scmp.lt.s32.totalorder %s3274_s12, %s3274_s12 }
   0xd   :  { %p3281_p6 = por %p3280_p5, %p3279_p4 }
   0xf   :  { %p3282_p7 = pnand %p3281_p6, %p3275_p3 }
  0x11   :  { %3285 = shalt.err (!%p3282_p7)
}
  0x12   :  { %s3360_s13 = smov 256   ;;  %s3361_s14 = smov 16  }
  0x13   :  { %42 = dma.hbm_to_vmem [thread:$0]  %s3556_s1, 16384, %s37_s25, [#allocation6], %s3360_s13, %s3360_s13, %s3361_s14  }
  0x14   :  { %s3286_s19 = scalar_lea.hbm %s3555_s0, 16384 }
  0x15   :  { %p3287_p8 = scmp.ne.s32.totalorder %s3555_s0, %s3286_s19  ;;  %p3290_p9 = scmp.lt.u32.totalorder %s3286_s19, %s3555_s0 }
  0x17   :  { %p3292_p10 = pnand %p3290_p9, %p3287_p8 }
  0x19   :  { %3295 = shalt.err (!%p3292_p10)
}
  0x1a   :  { %s3296_s24 = scalar_lea.vmem %s3408_s27, 16384  ;;  %p3301_p12 = scmp.lt.s32.totalorder %s3408_s27, %s3408_s27 }
  0x1b   :  { %p3297_p11 = scmp.ne.s32.totalorder %s3408_s27, %s3296_s24  ;;  %p3302_p13 = scmp.lt.s32.totalorder %s3296_s24, %s3296_s24 }
  0x1d   :  { %p3303_p0 = por %p3302_p13, %p3301_p12 }
  0x1f   :  { %p3304_p1 = pnand %p3303_p0, %p3297_p11 }
  0x21   :  { %3307 = shalt.err (!%p3304_p1)
}
  0x22   :  { %30 = dma.hbm_to_vmem [thread:$0]  %s3555_s0, 16384, %s3408_s27, [#allocation3], %s3360_s13, %s3360_s13, %s3361_s14  }
  0x23   :  { %s3362_s26 = smov [#allocation7]   ;;  %s3308_s8 = scalar_lea.hbm %s3558_s3, 4096 }
  0x24   :  { %s50_s28 = sshll.u32 %s3362_s26, 4  ;;  %p3309_p2 = scmp.ne.s32.totalorder %s3558_s3, %s3308_s8  ;;  %s51_s28 = int_to_ptr.vmem [resolvable:$true] %s50_s28 }
  0x25   :  { %p3312_p3 = scmp.lt.u32.totalorder %s3308_s8, %s3558_s3 }
  0x27   :  { %p3314_p4 = pnand %p3312_p3, %p3309_p2 }
  0x29   :  { %3317 = shalt.err (!%p3314_p4)
}
  0x2a   :  { %s3318_s15 = scalar_lea.vmem %s51_s28, 4096  ;;  %p3323_p6 = scmp.lt.s32.totalorder %s51_s28, %s51_s28 }
  0x2b   :  { %p3319_p5 = scmp.ne.s32.totalorder %s51_s28, %s3318_s15  ;;  %p3324_p7 = scmp.lt.s32.totalorder %s3318_s15, %s3318_s15 }
  0x2d   :  { %p3325_p8 = por %p3324_p7, %p3323_p6 }
  0x2f   :  { %p3326_p9 = pnand %p3325_p8, %p3319_p5 }
  0x31   :  { %3329 = shalt.err (!%p3326_p9)
}
  0x32   :  { %s3363_s0 = smov 64   ;;  %s3364_s27 = smov 4  }
  0x33   :  { %56 = dma.hbm_to_vmem [thread:$0]  %s3558_s3, 4096, %s51_s28, [#allocation6], %s3363_s0, %s3363_s0, %s3364_s27  }
  0x34   :  { %3352 = dma.done.wait [#allocation3], 16384  }
  0x35   :  { %3353 = vsyncadd [#allocation3], 4294950912 }
  0x36   :  { %3354 = dma.done.wait [#allocation6], 20480  }
  0x37   :  { %3355 = vsyncadd [#allocation6], 4294946816  ;;  %v2846_v0 = vld [vmem:[#allocation5 + $0x4] ss:$16 sps:$4 sm:$0xff]   ;;  %v2850_v2 = vld [vmem:[#allocation5] ss:$16 sps:$4 sm:$0xff]  }
  0x38   :  { %v2848_v1 = vld [vmem:[#allocation5 + $0x204] ss:$16 sps:$4 sm:$0xff]   ;;  %1096 = vmatprep.subr.bf16.mxu0 %v2846_v0  ;;  %v2851_v3 = vld [vmem:[#allocation5 + $0x200] ss:$16 sps:$4 sm:$0xff]   ;;  %v3365_v58 = vmov 0.0   ;;  %vm2471_vm0 = vcmask 1041408  }
  0x39   :  { %1137 = vmatprep.subr.bf16.mxu1 %v2848_v1  ;;  %v2852_v4 = vld [vmem:[#allocation5 + $0x24] ss:$16 sps:$4 sm:$0xff]   ;;  %1097 = vmatpush1.bf16.msra.mxu0 %v2850_v2  ;;  %v2856_v6 = vld [vmem:[#allocation5 + $0x20] ss:$16 sps:$4 sm:$0xff]   ;;  %v3366_v63 = vmov 1966171168   ;;  %v439_v1 = vlaneseq }
  0x3a   :  { %1138 = vmatpush1.bf16.msra.mxu1 %v2851_v3  ;;  %v2854_v5 = vld [vmem:[#allocation5 + $0x224] ss:$16 sps:$4 sm:$0xff]   ;;  %1098 = vmatprep.subr.bf16.mxu0 %v2852_v4  ;;  %v2857_v7 = vld [vmem:[#allocation5 + $0x220] ss:$16 sps:$4 sm:$0xff]   ;;  %v437_v0 = vunpack.c.l.s4 %v3366_v63  ;;  %v3001_v63 = vld [vmem:[#allocation5 + $0x32c] ss:$16 sps:$4 sm:$0xff]  }
  0x3b   :  { %1139 = vmatprep.subr.bf16.mxu1 %v2854_v5  ;;  %v2858_v8 = vld [vmem:[#allocation5 + $0x44] ss:$16 sps:$4 sm:$0xff]   ;;  %v2862_v10 = vld [vmem:[#allocation5 + $0x40] ss:$16 sps:$4 sm:$0xff]   ;;  %s3367_s9 = smov [#allocation8]  }
  0x3c   :  { %v2860_v9 = vld [vmem:[#allocation5 + $0x244] ss:$16 sps:$4 sm:$0xff]   ;;  %v2863_v11 = vld [vmem:[#allocation5 + $0x240] ss:$16 sps:$4 sm:$0xff]   ;;  %s2485_s10 = sshll.u32 %s3367_s9, 4  ;;  %s2486_s10 = int_to_ptr.vmem [resolvable:$true] %s2485_s10 }
  0x3d   :  { %1099 = vmatpush1.bf16.msra.mxu0 %v2856_v6  ;;  %v2864_v12 = vld [vmem:[#allocation5 + $0x64] ss:$16 sps:$4 sm:$0xff]   ;;  %v2868_v14 = vld [vmem:[#allocation5 + $0x60] ss:$16 sps:$4 sm:$0xff]   ;;  %v438_v6 = vunpack.c.0.s8 %v437_v0  ;;  %v2996_v0 = vld [vmem:[#allocation5 + $0x128] ss:$16 sps:$4 sm:$0xff]   ;;  %p3335_p11 = scmp.lt.s32.totalorder %s2486_s10, %s2486_s10 }
  0x3e   :  { %1140 = vmatpush1.bf16.msra.mxu1 %v2857_v7  ;;  %1100 = vmatprep.subr.bf16.mxu0 %v2858_v8  ;;  %v2866_v13 = vld [vmem:[#allocation5 + $0x264] ss:$16 sps:$4 sm:$0xff]   ;;  %v2869_v15 = vld [vmem:[#allocation5 + $0x260] ss:$16 sps:$4 sm:$0xff]   ;;  %v3467_v7 = vshrl.u32 %v439_v1, 7 }
  0x3f   :  { %1141 = vmatprep.subr.bf16.mxu1 %v2860_v9  ;;  %v2870_v16 = vld [vmem:[#allocation5 + $0x84] ss:$16 sps:$4 sm:$0xff]   ;;  %v2874_v18 = vld [vmem:[#allocation5 + $0x80] ss:$16 sps:$4 sm:$0xff]   ;;  %v2999_v1 = vld [vmem:[#allocation5 + $0x328] ss:$16 sps:$4 sm:$0xff]  }
  0x40   :  { %v2872_v17 = vld [vmem:[#allocation5 + $0x284] ss:$16 sps:$4 sm:$0xff]   ;;  %v2875_v19 = vld [vmem:[#allocation5 + $0x280] ss:$16 sps:$4 sm:$0xff]  }
  0x41   :  { %1101 = vmatpush1.bf16.msra.mxu0 %v2862_v10  ;;  %v2876_v20 = vld [vmem:[#allocation5 + $0xa4] ss:$16 sps:$4 sm:$0xff]   ;;  %v2880_v22 = vld [vmem:[#allocation5 + $0xa0] ss:$16 sps:$4 sm:$0xff]  }
  0x42   :  { %1142 = vmatpush1.bf16.msra.mxu1 %v2863_v11  ;;  %1102 = vmatprep.subr.bf16.mxu0 %v2864_v12  ;;  %v2878_v21 = vld [vmem:[#allocation5 + $0x2a4] ss:$16 sps:$4 sm:$0xff]   ;;  %v2881_v23 = vld [vmem:[#allocation5 + $0x2a0] ss:$16 sps:$4 sm:$0xff]  }
  0x43   :  { %1143 = vmatprep.subr.bf16.mxu1 %v2866_v13  ;;  %v2882_v24 = vld [vmem:[#allocation5 + $0xc4] ss:$16 sps:$4 sm:$0xff]   ;;  %v2886_v26 = vld [vmem:[#allocation5 + $0xc0] ss:$16 sps:$4 sm:$0xff]  }
  0x44   :  { %v2884_v25 = vld [vmem:[#allocation5 + $0x2c4] ss:$16 sps:$4 sm:$0xff]   ;;  %v2887_v27 = vld [vmem:[#allocation5 + $0x2c0] ss:$16 sps:$4 sm:$0xff]  }
  0x45   :  { %1103 = vmatpush1.bf16.msra.mxu0 %v2868_v14  ;;  %v2888_v28 = vld [vmem:[#allocation5 + $0xe4] ss:$16 sps:$4 sm:$0xff]   ;;  %v2892_v30 = vld [vmem:[#allocation5 + $0xe0] ss:$16 sps:$4 sm:$0xff]   ;;  %v3470_v14 = vsub.s32 %v438_v6, %v3467_v7  ;;  %v3010_v6 = vld [vmem:[#allocation5 + $0x16c] ss:$16 sps:$4 sm:$0xff]  }
  0x46   :  { %1144 = vmatpush1.bf16.msra.mxu1 %v2869_v15  ;;  %1104 = vmatprep.subr.bf16.mxu0 %v2870_v16  ;;  %v2890_v29 = vld [vmem:[#allocation5 + $0x2e4] ss:$16 sps:$4 sm:$0xff]   ;;  %v2893_v31 = vld [vmem:[#allocation5 + $0x2e0] ss:$16 sps:$4 sm:$0xff]  }
  0x47   :  { %1145 = vmatprep.subr.bf16.mxu1 %v2872_v17  ;;  %v2894_v32 = vld [vmem:[#allocation5 + $0x104] ss:$16 sps:$4 sm:$0xff]   ;;  %v2898_v34 = vld [vmem:[#allocation5 + $0x100] ss:$16 sps:$4 sm:$0xff]  }
  0x48   :  { %v2896_v33 = vld [vmem:[#allocation5 + $0x304] ss:$16 sps:$4 sm:$0xff]   ;;  %v2899_v35 = vld [vmem:[#allocation5 + $0x300] ss:$16 sps:$4 sm:$0xff]  }
  0x49   :  { %1105 = vmatpush1.bf16.msra.mxu0 %v2874_v18  ;;  %v2900_v36 = vld [vmem:[#allocation5 + $0x124] ss:$16 sps:$4 sm:$0xff]   ;;  %v2904_v38 = vld [vmem:[#allocation5 + $0x120] ss:$16 sps:$4 sm:$0xff]  }
  0x4a   :  { %1146 = vmatpush1.bf16.msra.mxu1 %v2875_v19  ;;  %1106 = vmatprep.subr.bf16.mxu0 %v2876_v20  ;;  %v2902_v37 = vld [vmem:[#allocation5 + $0x324] ss:$16 sps:$4 sm:$0xff]   ;;  %v2905_v39 = vld [vmem:[#allocation5 + $0x320] ss:$16 sps:$4 sm:$0xff]  }
  0x4b   :  { %1147 = vmatprep.subr.bf16.mxu1 %v2878_v21  ;;  %v2906_v40 = vld [vmem:[#allocation5 + $0x144] ss:$16 sps:$4 sm:$0xff]   ;;  %v2910_v42 = vld [vmem:[#allocation5 + $0x140] ss:$16 sps:$4 sm:$0xff]  }
  0x4c   :  { %v2908_v41 = vld [vmem:[#allocation5 + $0x344] ss:$16 sps:$4 sm:$0xff]   ;;  %v2911_v43 = vld [vmem:[#allocation5 + $0x340] ss:$16 sps:$4 sm:$0xff]  }
  0x4d   :  { %1107 = vmatpush1.bf16.msra.mxu0 %v2880_v22  ;;  %v2912_v44 = vld [vmem:[#allocation5 + $0x164] ss:$16 sps:$4 sm:$0xff]   ;;  %v2916_v46 = vld [vmem:[#allocation5 + $0x160] ss:$16 sps:$4 sm:$0xff]  }
  0x4e   :  { %1148 = vmatpush1.bf16.msra.mxu1 %v2881_v23  ;;  %1108 = vmatprep.subr.bf16.mxu0 %v2882_v24  ;;  %v2914_v45 = vld [vmem:[#allocation5 + $0x364] ss:$16 sps:$4 sm:$0xff]   ;;  %v2917_v47 = vld [vmem:[#allocation5 + $0x360] ss:$16 sps:$4 sm:$0xff]   ;;  %v2944_v23 = vld [vmem:[#allocation5 + $0xc] ss:$16 sps:$4 sm:$0xff]  }
  0x4f   :  { %1149 = vmatprep.subr.bf16.mxu1 %v2884_v25  ;;  %v121_v48 = vld [vmem:[%s3561_s6] ss:$4 sm:$0x3]  ;;  %v2498_v49 = vld [vmem:[%s3561_s6 + $0x1] ss:$4 sm:$0x3] }
  0x50   :  { %v122_v50 = vunpack.i.l.bf16 %v121_v48  ;;  %v134_v51 = vunpack.i.l.bf16 %v2498_v49  ;;  %v2499_v52 = vld [vmem:[%s3561_s6 + $0x2] ss:$4 sm:$0x3]  ;;  %v2500_v53 = vld [vmem:[%s3561_s6 + $0x3] ss:$4 sm:$0x3] }
  0x51   :  { %1109 = vmatpush1.bf16.msra.mxu0 %v2886_v26  ;;  %v2918_v54 = vld [vmem:[#allocation5 + $0x184] ss:$16 sps:$4 sm:$0xff]   ;;  %v147_v56 = vunpack.i.l.bf16 %v2499_v52  ;;  %v160_v57 = vunpack.i.l.bf16 %v2500_v53  ;;  %v2922_v2 = vld [vmem:[#allocation5 + $0x180] ss:$16 sps:$4 sm:$0xff]   ;;  %v2947_v25 = vld [vmem:[#allocation5 + $0x20c] ss:$16 sps:$4 sm:$0xff]  }
  0x52   :  { %1150 = vmatpush1.bf16.msra.mxu1 %v2887_v27  ;;  %1110 = vmatprep.subr.bf16.mxu0 %v2888_v28  ;;  %v2920_v55 = vld [vmem:[#allocation5 + $0x384] ss:$16 sps:$4 sm:$0xff]   ;;  %v126_v59 = vpack.c.bf16 %v3365_v58, %v122_v50  ;;  %v139_v60 = vpack.c.bf16 %v3365_v58, %v134_v51  ;;  %v2923_v3 = vld [vmem:[#allocation5 + $0x380] ss:$16 sps:$4 sm:$0xff]   ;;  %v2942_v27 = vld [vmem:[#allocation5 + $0x8] ss:$16 sps:$4 sm:$0xff]  }
  0x53   :  { %1151 = vmatprep.subr.bf16.mxu1 %v2890_v29  ;;  %v152_v61 = vpack.c.bf16 %v3365_v58, %v147_v56  ;;  %v165_v62 = vpack.c.bf16 %v3365_v58, %v160_v57  ;;  %v2924_v4 = vld [vmem:[#allocation5 + $0x1a4] ss:$16 sps:$4 sm:$0xff]   ;;  %v2928_v8 = vld [vmem:[#allocation5 + $0x1a0] ss:$16 sps:$4 sm:$0xff]   ;;  %v2945_v28 = vld [vmem:[#allocation5 + $0x208] ss:$16 sps:$4 sm:$0xff]  }
  0x54   :  { %128 = vst [vmem:[#allocation10] sm:$0x1] %v126_v59  ;;  %141 = vst [vmem:[#allocation10 + $0x1] sm:$0x1] %v139_v60  ;;  %v2926_v5 = vld [vmem:[#allocation5 + $0x3a4] ss:$16 sps:$4 sm:$0xff]  }
  0x55   :  { %1111 = vmatpush1.bf16.msra.mxu0 %v2892_v30  ;;  %154 = vst [vmem:[#allocation10 + $0x2] sm:$0x1] %v152_v61  ;;  %167 = vst [vmem:[#allocation10 + $0x3] sm:$0x1] %v165_v62  ;;  %v2929_v9 = vld [vmem:[#allocation5 + $0x3a0] ss:$16 sps:$4 sm:$0xff]  }
  0x56   :  { %1152 = vmatpush1.bf16.msra.mxu1 %v2893_v31  ;;  %1112 = vmatprep.subr.bf16.mxu0 %v2894_v32  ;;  %v2930_v10 = vld [vmem:[#allocation5 + $0x1c4] ss:$16 sps:$4 sm:$0xff]   ;;  %v2934_v12 = vld [vmem:[#allocation5 + $0x1c0] ss:$16 sps:$4 sm:$0xff]   ;;  %v2950_v29 = vld [vmem:[#allocation5 + $0x2c] ss:$16 sps:$4 sm:$0xff]  }
  0x57   :  { %1153 = vmatprep.subr.bf16.mxu1 %v2896_v33  ;;  %v2932_v11 = vld [vmem:[#allocation5 + $0x3c4] ss:$16 sps:$4 sm:$0xff]   ;;  %v2935_v13 = vld [vmem:[#allocation5 + $0x3c0] ss:$16 sps:$4 sm:$0xff]   ;;  %v2953_v30 = vld [vmem:[#allocation5 + $0x22c] ss:$16 sps:$4 sm:$0xff]  }
  0x58   :  { %v2936_v15 = vld [vmem:[#allocation5 + $0x1e4] ss:$16 sps:$4 sm:$0xff]   ;;  %v2940_v19 = vld [vmem:[#allocation5 + $0x1e0] ss:$16 sps:$4 sm:$0xff]   ;;  %v2948_v31 = vld [vmem:[#allocation5 + $0x28] ss:$16 sps:$4 sm:$0xff]  }
  0x59   :  { %1113 = vmatpush1.bf16.msra.mxu0 %v2898_v34  ;;  %v2938_v17 = vld [vmem:[#allocation5 + $0x3e4] ss:$16 sps:$4 sm:$0xff]   ;;  %v2941_v20 = vld [vmem:[#allocation5 + $0x3e0] ss:$16 sps:$4 sm:$0xff]   ;;  %v2951_v32 = vld [vmem:[#allocation5 + $0x228] ss:$16 sps:$4 sm:$0xff]  }
  0x5a   :  { %1154 = vmatpush1.bf16.msra.mxu1 %v2899_v35  ;;  %1114 = vmatprep.subr.bf16.mxu0 %v2900_v36  ;;  %v2956_v33 = vld [vmem:[#allocation5 + $0x4c] ss:$16 sps:$4 sm:$0xff]   ;;  %v2954_v35 = vld [vmem:[#allocation5 + $0x48] ss:$16 sps:$4 sm:$0xff]  }
  0x5b   :  { %1155 = vmatprep.subr.bf16.mxu1 %v2902_v37  ;;  %v2959_v34 = vld [vmem:[#allocation5 + $0x24c] ss:$16 sps:$4 sm:$0xff]   ;;  %v2957_v36 = vld [vmem:[#allocation5 + $0x248] ss:$16 sps:$4 sm:$0xff]  }
  0x5c   :  { %v2501_v16 = vld.sshfl [vmem:[#allocation10] sm:$0x33 pattern:$0x75316420]  ;;  %v2962_v37 = vld [vmem:[#allocation5 + $0x6c] ss:$16 sps:$4 sm:$0xff]  }
  0x5d   :  { %1115 = vmatpush1.bf16.msra.mxu0 %v2904_v38  ;;  %v435_v18 = vcombine.high %v2501_v16, %v2501_v16  ;;  %v3474_v22 = vrot.slane %v2501_v16, %v3470_v14  ;;  %v2965_v38 = vld [vmem:[#allocation5 + $0x26c] ss:$16 sps:$4 sm:$0xff]   ;;  %v2975_v48 = vld [vmem:[#allocation5 + $0x2a8] ss:$16 sps:$4 sm:$0xff]  }
  0x5e   :  { %1156 = vmatpush1.bf16.msra.mxu1 %v2905_v39  ;;  %1116 = vmatprep.subr.bf16.mxu0 %v2906_v40  ;;  %v2960_v39 = vld [vmem:[#allocation5 + $0x68] ss:$16 sps:$4 sm:$0xff]   ;;  %v2980_v49 = vld [vmem:[#allocation5 + $0xcc] ss:$16 sps:$4 sm:$0xff]  }
  0x5f   :  { %1157 = vmatprep.subr.bf16.mxu1 %v2908_v41  ;;  %v449_v21 = vrot.slane %v435_v18, %v3470_v14  ;;  %v3478_v26 = vcombine.high %v3474_v22, %v3474_v22  ;;  %v2963_v40 = vld [vmem:[#allocation5 + $0x268] ss:$16 sps:$4 sm:$0xff]   ;;  %v2968_v41 = vld [vmem:[#allocation5 + $0x8c] ss:$16 sps:$4 sm:$0xff]  }
  0x60   :  { %v2983_v50 = vld [vmem:[#allocation5 + $0x2cc] ss:$16 sps:$4 sm:$0xff]   ;;  %v2978_v51 = vld [vmem:[#allocation5 + $0xc8] ss:$16 sps:$4 sm:$0xff]  }
  0x61   :  { %1117 = vmatpush1.bf16.msra.mxu0 %v2910_v42  ;;  %v451_v24 = vcombine.high %v449_v21, %v449_v21  ;;  %1128 = vmatprep.mubr.bf16.mxu0 %v449_v21  ;;  %v2971_v42 = vld [vmem:[#allocation5 + $0x28c] ss:$16 sps:$4 sm:$0xff]   ;;  %v2981_v52 = vld [vmem:[#allocation5 + $0x2c8] ss:$16 sps:$4 sm:$0xff]  }
  0x62   :  { %1158 = vmatpush1.bf16.msra.mxu1 %v2911_v43  ;;  %1118 = vmatprep.subr.bf16.mxu0 %v2912_v44  ;;  %v2966_v43 = vld [vmem:[#allocation5 + $0x88] ss:$16 sps:$4 sm:$0xff]   ;;  %v2986_v53 = vld [vmem:[#allocation5 + $0xec] ss:$16 sps:$4 sm:$0xff]  }
  0x63   :  { %1159 = vmatprep.subr.bf16.mxu1 %v2914_v45  ;;  %1169 = vmatprep.mubr.bf16.mxu1 %v451_v24  ;;  %v2969_v44 = vld [vmem:[#allocation5 + $0x288] ss:$16 sps:$4 sm:$0xff]   ;;  %v2974_v45 = vld [vmem:[#allocation5 + $0xac] ss:$16 sps:$4 sm:$0xff]  }
  0x64   :  { %v2987_v56 = vld [vmem:[#allocation5 + $0x2e8] ss:$16 sps:$4 sm:$0xff]   ;;  %v2992_v57 = vld [vmem:[#allocation5 + $0x10c] ss:$16 sps:$4 sm:$0xff]  }
  0x65   :  { %1119 = vmatpush1.bf16.msra.mxu0 %v2916_v46  ;;  %v2977_v46 = vld [vmem:[#allocation5 + $0x2ac] ss:$16 sps:$4 sm:$0xff]   ;;  %v2990_v60 = vld [vmem:[#allocation5 + $0x108] ss:$16 sps:$4 sm:$0xff]  }
  0x66   :  { %1160 = vmatpush1.bf16.msra.mxu1 %v2917_v47  ;;  %1120 = vmatprep.subr.bf16.mxu0 %v2918_v54  ;;  %v2972_v47 = vld [vmem:[#allocation5 + $0xa8] ss:$16 sps:$4 sm:$0xff]   ;;  %v2989_v54 = vld [vmem:[#allocation5 + $0x2ec] ss:$16 sps:$4 sm:$0xff]  }
  0x67   :  { %1161 = vmatprep.subr.bf16.mxu1 %v2920_v55  ;;  %v2984_v55 = vld [vmem:[#allocation5 + $0xe8] ss:$16 sps:$4 sm:$0xff]   ;;  %v2995_v59 = vld [vmem:[#allocation5 + $0x30c] ss:$16 sps:$4 sm:$0xff]  }
  0x68   :  { %v2993_v61 = vld [vmem:[#allocation5 + $0x308] ss:$16 sps:$4 sm:$0xff]   ;;  %v2998_v62 = vld [vmem:[#allocation5 + $0x12c] ss:$16 sps:$4 sm:$0xff]  }
  0x69   :  { %1121 = vmatpush1.bf16.msra.mxu0 %v2922_v2  ;;  %v3004_v2 = vld [vmem:[#allocation5 + $0x14c] ss:$16 sps:$4 sm:$0xff]   ;;  %v3020_v18 = vld [vmem:[#allocation5 + $0x1a8] ss:$16 sps:$4 sm:$0xff]  }
  0x6a   :  { %1162 = vmatpush1.bf16.msra.mxu1 %v2923_v3  ;;  %1122 = vmatprep.subr.bf16.mxu0 %v2924_v4  ;;  %v3007_v3 = vld [vmem:[#allocation5 + $0x34c] ss:$16 sps:$4 sm:$0xff]   ;;  %v3002_v4 = vld [vmem:[#allocation5 + $0x148] ss:$16 sps:$4 sm:$0xff]  }
  0x6b   :  { %1163 = vmatprep.subr.bf16.mxu1 %v2926_v5  ;;  %v3005_v5 = vld [vmem:[#allocation5 + $0x348] ss:$16 sps:$4 sm:$0xff]   ;;  %v3022_v16 = vld [vmem:[#allocation5 + $0x1ac] ss:$16 sps:$4 sm:$0xff]  }
  0x6d   :  { %1123 = vmatpush1.bf16.msra.mxu0 %v2928_v8  ;;  %v3013_v8 = vld [vmem:[#allocation5 + $0x36c] ss:$16 sps:$4 sm:$0xff]  }
  0x6e   :  { %1164 = vmatpush1.bf16.msra.mxu1 %v2929_v9  ;;  %1124 = vmatprep.subr.bf16.mxu0 %v2930_v10  ;;  %v3008_v9 = vld [vmem:[#allocation5 + $0x168] ss:$16 sps:$4 sm:$0xff]  }
  0x6f   :  { %1165 = vmatprep.subr.bf16.mxu1 %v2932_v11  ;;  %v3011_v10 = vld [vmem:[#allocation5 + $0x368] ss:$16 sps:$4 sm:$0xff]   ;;  %v3016_v11 = vld [vmem:[#allocation5 + $0x18c] ss:$16 sps:$4 sm:$0xff]  }
  0x71   :  { %1125 = vmatpush1.bf16.msra.mxu0 %v2934_v12  ;;  %v3019_v12 = vld [vmem:[#allocation5 + $0x38c] ss:$16 sps:$4 sm:$0xff]  }
  0x72   :  { %1166 = vmatpush1.bf16.msra.mxu1 %v2935_v13  ;;  %1126 = vmatprep.subr.bf16.mxu0 %v2936_v15  ;;  %v3014_v13 = vld [vmem:[#allocation5 + $0x188] ss:$16 sps:$4 sm:$0xff]  }
  0x73   :  { %1167 = vmatprep.subr.bf16.mxu1 %v2938_v17  ;;  %v3017_v15 = vld [vmem:[#allocation5 + $0x388] ss:$16 sps:$4 sm:$0xff]   ;;  %v3025_v17 = vld [vmem:[#allocation5 + $0x3ac] ss:$16 sps:$4 sm:$0xff]  }
  0x75   :  { %1127 = vmatpush1.bf16.msra.mxu0 %v2940_v19  ;;  %v3023_v19 = vld [vmem:[#allocation5 + $0x3a8] ss:$16 sps:$4 sm:$0xff]  }
  0x76   :  { %1168 = vmatpush1.bf16.msra.mxu1 %v2941_v20  ;;  %1178 = vmatprep.subr.bf16.mxu0 %v2944_v23  ;;  %v3028_v20 = vld [vmem:[#allocation5 + $0x1cc] ss:$16 sps:$4 sm:$0xff]   ;;  %v3026_v23 = vld [vmem:[#allocation5 + $0x1c8] ss:$16 sps:$4 sm:$0xff]  }
  0x77   :  { %1219 = vmatprep.subr.bf16.mxu1 %v2947_v25  ;;  %v3034_v25 = vld [vmem:[#allocation5 + $0x1ec] ss:$16 sps:$4 sm:$0xff]  }
  0x78   :  { %1129 = vmatmul.mubr.bf16.vlgmr.msra.gmra.mrb[0].mxu0 %v3474_v22 }
  0x79   :  { %1170 = vmatmul.mubr.bf16.vlgmr.msra.gmra.mrb[0].mxu1 %v3478_v26  ;;  %1179 = vmatpush1.bf16.msra.mxu0 %v2942_v27  ;;  %v3037_v27 = vld [vmem:[#allocation5 + $0x3ec] ss:$16 sps:$4 sm:$0xff]  }
  0x7a   :  { %1220 = vmatpush1.bf16.msra.mxu1 %v2945_v28  ;;  %1180 = vmatprep.subr.bf16.mxu0 %v2950_v29  ;;  %v3032_v28 = vld [vmem:[#allocation5 + $0x1e8] ss:$16 sps:$4 sm:$0xff]  }
  0x7b   :  { %1221 = vmatprep.subr.bf16.mxu1 %v2953_v30  ;;  %1210 = vmatprep.mubr.bf16.mxu0 %v449_v21  ;;  %v3031_v21 = vld [vmem:[#allocation5 + $0x3cc] ss:$16 sps:$4 sm:$0xff]   ;;  %v3035_v29 = vld [vmem:[#allocation5 + $0x3e8] ss:$16 sps:$4 sm:$0xff]   ;;  %v3040_v30 = vld [vmem:[#allocation2 + $0x4] ss:$16 sps:$4 sm:$0xff]  }
  0x7c   :  { %1251 = vmatprep.mubr.bf16.mxu1 %v451_v24  ;;  %v3029_v24 = vld [vmem:[#allocation5 + $0x3c8] ss:$16 sps:$4 sm:$0xff]  }
  0x7d   :  { %1181 = vmatpush1.bf16.msra.mxu0 %v2948_v31  ;;  %v3043_v31 = vld [vmem:[#allocation2 + $0x204] ss:$16 sps:$4 sm:$0xff]  }
  0x7e   :  { %1222 = vmatpush1.bf16.msra.mxu1 %v2951_v32  ;;  %1182 = vmatprep.subr.bf16.mxu0 %v2956_v33  ;;  %v3038_v32 = vld [vmem:[#allocation2] ss:$16 sps:$4 sm:$0xff]  }
  0x7f   :  { %1223 = vmatprep.subr.bf16.mxu1 %v2959_v34  ;;  %v3041_v33 = vld [vmem:[#allocation2 + $0x200] ss:$16 sps:$4 sm:$0xff]   ;;  %v3046_v34 = vld [vmem:[#allocation2 + $0x24] ss:$16 sps:$4 sm:$0xff]  }
  0x81   :  { %1183 = vmatpush1.bf16.msra.mxu0 %v2954_v35  ;;  %v3049_v35 = vld [vmem:[#allocation2 + $0x224] ss:$16 sps:$4 sm:$0xff]  }
  0x82   :  { %1224 = vmatpush1.bf16.msra.mxu1 %v2957_v36  ;;  %1184 = vmatprep.subr.bf16.mxu0 %v2962_v37  ;;  %v3044_v36 = vld [vmem:[#allocation2 + $0x20] ss:$16 sps:$4 sm:$0xff]  }
  0x83   :  { %1225 = vmatprep.subr.bf16.mxu1 %v2965_v38  ;;  %v3047_v37 = vld [vmem:[#allocation2 + $0x220] ss:$16 sps:$4 sm:$0xff]   ;;  %v71_v38 = vld [vmem:[%s3560_s5] ss:$4 sm:$0x3] }
  0x85   :  { %1185 = vmatpush1.bf16.msra.mxu0 %v2960_v39  ;;  %v2495_v39 = vld [vmem:[%s3560_s5 + $0x1] ss:$4 sm:$0x3] }
  0x86   :  { %1226 = vmatpush1.bf16.msra.mxu1 %v2963_v40  ;;  %1186 = vmatprep.subr.bf16.mxu0 %v2968_v41  ;;  %v72_v40 = vunpack.i.l.bf16 %v71_v38  ;;  %v84_v41 = vunpack.i.l.bf16 %v2495_v39  ;;  %v3116_v38 = vld [vmem:[#allocation2 + $0x1a0] ss:$16 sps:$4 sm:$0xff]  }
  0x87   :  { %1227 = vmatprep.subr.bf16.mxu1 %v2971_v42  ;;  %v2496_v42 = vld [vmem:[%s3560_s5 + $0x2] ss:$4 sm:$0x3]  ;;  %v3119_v39 = vld [vmem:[#allocation2 + $0x3a0] ss:$16 sps:$4 sm:$0xff]  }
  0x89   :  { %1187 = vmatpush1.bf16.msra.mxu0 %v2966_v43  ;;  %v3055_v43 = vld [vmem:[#allocation2 + $0x244] ss:$16 sps:$4 sm:$0xff]  }
  0x8a   :  { %1228 = vmatpush1.bf16.msra.mxu1 %v2969_v44  ;;  %1188 = vmatprep.subr.bf16.mxu0 %v2974_v45  ;;  %v97_v44 = vunpack.i.l.bf16 %v2496_v42  ;;  %v3122_v42 = vld [vmem:[#allocation2 + $0x1c0] ss:$16 sps:$4 sm:$0xff]  }
  0x8b   :  { %1229 = vmatprep.subr.bf16.mxu1 %v2977_v46  ;;  %v76_v46 = vpack.c.bf16 %v3365_v58, %v72_v40  ;;  %v3124_v40 = vld [vmem:[#allocation2 + $0x1c4] ss:$16 sps:$4 sm:$0xff]  }
  0x8d   :  { %1189 = vmatpush1.bf16.msra.mxu0 %v2972_v47  ;;  %v89_v47 = vpack.c.bf16 %v3365_v58, %v84_v41  ;;  %78 = vst [vmem:[#allocation9] sm:$0x1] %v76_v46  ;;  %v3127_v41 = vld [vmem:[#allocation2 + $0x3c4] ss:$16 sps:$4 sm:$0xff]  }
  0x8e   :  { %1230 = vmatpush1.bf16.msra.mxu1 %v2975_v48  ;;  %1190 = vmatprep.subr.bf16.mxu0 %v2980_v49  ;;  %v102_v48 = vpack.c.bf16 %v3365_v58, %v97_v44  ;;  %v3128_v44 = vld [vmem:[#allocation2 + $0x1e0] ss:$16 sps:$4 sm:$0xff]  }
  0x8f   :  { %1231 = vmatprep.subr.bf16.mxu1 %v2983_v50  ;;  %v3050_v50 = vld [vmem:[#allocation2 + $0x40] ss:$16 sps:$4 sm:$0xff]   ;;  %91 = vst [vmem:[#allocation9 + $0x1] sm:$0x1] %v89_v47  ;;  %v3136_v47 = vld [vmem:[#allocation2 + $0xc] ss:$16 sps:$4 sm:$0xff]  }
  0x90   :  { %104 = vst [vmem:[#allocation9 + $0x2] sm:$0x1] %v102_v48  ;;  %v3139_v48 = vld [vmem:[#allocation2 + $0x20c] ss:$16 sps:$4 sm:$0xff]  }
  0x91   :  { %1191 = vmatpush1.bf16.msra.mxu0 %v2978_v51  ;;  %v3053_v51 = vld [vmem:[#allocation2 + $0x240] ss:$16 sps:$4 sm:$0xff]  }
  0x92   :  { %1232 = vmatpush1.bf16.msra.mxu1 %v2981_v52  ;;  %1192 = vmatprep.subr.bf16.mxu0 %v2986_v53  ;;  %v3058_v52 = vld [vmem:[#allocation2 + $0x64] ss:$16 sps:$4 sm:$0xff]  }
  0x93   :  { %1233 = vmatprep.subr.bf16.mxu1 %v2989_v54  ;;  %v3061_v53 = vld [vmem:[#allocation2 + $0x264] ss:$16 sps:$4 sm:$0xff]   ;;  %v3056_v54 = vld [vmem:[#allocation2 + $0x60] ss:$16 sps:$4 sm:$0xff]  }
  0x95   :  { %1193 = vmatpush1.bf16.msra.mxu0 %v2984_v55  ;;  %v3059_v55 = vld [vmem:[#allocation2 + $0x260] ss:$16 sps:$4 sm:$0xff]  }
  0x96   :  { %1234 = vmatpush1.bf16.msra.mxu1 %v2987_v56  ;;  %1194 = vmatprep.subr.bf16.mxu0 %v2992_v57  ;;  %v3064_v56 = vld [vmem:[#allocation2 + $0x84] ss:$16 sps:$4 sm:$0xff]   ;;  %v3062_v57 = vld [vmem:[#allocation2 + $0x80] ss:$16 sps:$4 sm:$0xff]  }
  0x97   :  { %1235 = vmatprep.subr.bf16.mxu1 %v2995_v59  ;;  %v3065_v59 = vld [vmem:[#allocation2 + $0x280] ss:$16 sps:$4 sm:$0xff]  }
  0x99   :  { %1195 = vmatpush1.bf16.msra.mxu0 %v2990_v60  ;;  %v3070_v60 = vld [vmem:[#allocation2 + $0xa4] ss:$16 sps:$4 sm:$0xff]  }
  0x9a   :  { %1236 = vmatpush1.bf16.msra.mxu1 %v2993_v61  ;;  %1196 = vmatprep.subr.bf16.mxu0 %v2998_v62  ;;  %v3073_v62 = vld [vmem:[#allocation2 + $0x2a4] ss:$16 sps:$4 sm:$0xff]  }
  0x9b   :  { %1237 = vmatprep.subr.bf16.mxu1 %v3001_v63 }
  0x9d   :  { %1197 = vmatpush1.bf16.msra.mxu0 %v2996_v0  ;;  %v3068_v0 = vld [vmem:[#allocation2 + $0xa0] ss:$16 sps:$4 sm:$0xff]  }
  0x9e   :  { %1238 = vmatpush1.bf16.msra.mxu1 %v2999_v1  ;;  %1198 = vmatprep.subr.bf16.mxu0 %v3004_v2  ;;  %v3071_v1 = vld [vmem:[#allocation2 + $0x2a0] ss:$16 sps:$4 sm:$0xff]  }
  0x9f   :  { %1239 = vmatprep.subr.bf16.mxu1 %v3007_v3  ;;  %v3076_v3 = vld [vmem:[#allocation2 + $0xc4] ss:$16 sps:$4 sm:$0xff]  }
  0xa1   :  { %1199 = vmatpush1.bf16.msra.mxu0 %v3002_v4  ;;  %v3079_v4 = vld [vmem:[#allocation2 + $0x2c4] ss:$16 sps:$4 sm:$0xff]  }
  0xa2   :  { %1240 = vmatpush1.bf16.msra.mxu1 %v3005_v5  ;;  %1200 = vmatprep.subr.bf16.mxu0 %v3010_v6  ;;  %v3074_v6 = vld [vmem:[#allocation2 + $0xc0] ss:$16 sps:$4 sm:$0xff]  }
  0xa3   :  { %1241 = vmatprep.subr.bf16.mxu1 %v3013_v8  ;;  %v3077_v8 = vld [vmem:[#allocation2 + $0x2c0] ss:$16 sps:$4 sm:$0xff]  }
  0xa5   :  { %1201 = vmatpush1.bf16.msra.mxu0 %v3008_v9  ;;  %v3082_v9 = vld [vmem:[#allocation2 + $0xe4] ss:$16 sps:$4 sm:$0xff]  }
  0xa6   :  { %1242 = vmatpush1.bf16.msra.mxu1 %v3011_v10  ;;  %1202 = vmatprep.subr.bf16.mxu0 %v3016_v11  ;;  %v3085_v10 = vld [vmem:[#allocation2 + $0x2e4] ss:$16 sps:$4 sm:$0xff]   ;;  %v3080_v11 = vld [vmem:[#allocation2 + $0xe0] ss:$16 sps:$4 sm:$0xff]  }
  0xa7   :  { %1243 = vmatprep.subr.bf16.mxu1 %v3019_v12  ;;  %v3083_v12 = vld [vmem:[#allocation2 + $0x2e0] ss:$16 sps:$4 sm:$0xff]  }
  0xa9   :  { %1203 = vmatpush1.bf16.msra.mxu0 %v3014_v13  ;;  %v3088_v13 = vld [vmem:[#allocation2 + $0x104] ss:$16 sps:$4 sm:$0xff]  }
  0xaa   :  { %1244 = vmatpush1.bf16.msra.mxu1 %v3017_v15  ;;  %1204 = vmatprep.subr.bf16.mxu0 %v3022_v16  ;;  %v3091_v15 = vld [vmem:[#allocation2 + $0x304] ss:$16 sps:$4 sm:$0xff]   ;;  %v3086_v16 = vld [vmem:[#allocation2 + $0x100] ss:$16 sps:$4 sm:$0xff]  }
  0xab   :  { %1245 = vmatprep.subr.bf16.mxu1 %v3025_v17  ;;  %v3089_v17 = vld [vmem:[#allocation2 + $0x300] ss:$16 sps:$4 sm:$0xff]  }
  0xad   :  { %1205 = vmatpush1.bf16.msra.mxu0 %v3020_v18  ;;  %v3094_v18 = vld [vmem:[#allocation2 + $0x124] ss:$16 sps:$4 sm:$0xff]  }
  0xae   :  { %1246 = vmatpush1.bf16.msra.mxu1 %v3023_v19  ;;  %1206 = vmatprep.subr.bf16.mxu0 %v3028_v20  ;;  %v3097_v19 = vld [vmem:[#allocation2 + $0x324] ss:$16 sps:$4 sm:$0xff]   ;;  %v3092_v20 = vld [vmem:[#allocation2 + $0x120] ss:$16 sps:$4 sm:$0xff]  }
  0xaf   :  { %1247 = vmatprep.subr.bf16.mxu1 %v3031_v21  ;;  %v3095_v21 = vld [vmem:[#allocation2 + $0x320] ss:$16 sps:$4 sm:$0xff]  }
  0xb1   :  { %1207 = vmatpush1.bf16.msra.mxu0 %v3026_v23  ;;  %v3100_v23 = vld [vmem:[#allocation2 + $0x144] ss:$16 sps:$4 sm:$0xff]  }
  0xb2   :  { %1248 = vmatpush1.bf16.msra.mxu1 %v3029_v24  ;;  %1208 = vmatprep.subr.bf16.mxu0 %v3034_v25  ;;  %v3103_v24 = vld [vmem:[#allocation2 + $0x344] ss:$16 sps:$4 sm:$0xff]   ;;  %v3098_v25 = vld [vmem:[#allocation2 + $0x140] ss:$16 sps:$4 sm:$0xff]  }
  0xb3   :  { %1249 = vmatprep.subr.bf16.mxu1 %v3037_v27  ;;  %v3101_v27 = vld [vmem:[#allocation2 + $0x340] ss:$16 sps:$4 sm:$0xff]  }
  0xb5   :  { %1209 = vmatpush1.bf16.msra.mxu0 %v3032_v28  ;;  %v3106_v28 = vld [vmem:[#allocation2 + $0x164] ss:$16 sps:$4 sm:$0xff]  }
  0xb6   :  { %1250 = vmatpush1.bf16.msra.mxu1 %v3035_v29  ;;  %1929 = vmatprep.subr.bf16.mxu0 %v3040_v30  ;;  %v3109_v29 = vld [vmem:[#allocation2 + $0x364] ss:$16 sps:$4 sm:$0xff]   ;;  %v3104_v30 = vld [vmem:[#allocation2 + $0x160] ss:$16 sps:$4 sm:$0xff]  }
  0xb7   :  { %1970 = vmatprep.subr.bf16.mxu1 %v3043_v31  ;;  %v3107_v31 = vld [vmem:[#allocation2 + $0x360] ss:$16 sps:$4 sm:$0xff]  }
  0xb8   :  { %1211 = vmatmul.mubr.bf16.vlgmr.msra.gmra.mrb[4].mxu0 %v3474_v22  ;;  %v2497_v22 = vld [vmem:[%s3560_s5 + $0x3] ss:$4 sm:$0x3] }
  0xb9   :  { %1252 = vmatmul.mubr.bf16.vlgmr.msra.gmra.mrb[4].mxu1 %v3478_v26  ;;  %1930 = vmatpush1.bf16.msra.mxu0 %v3038_v32  ;;  %v3052_v26 = vld [vmem:[#allocation2 + $0x44] ss:$16 sps:$4 sm:$0xff]   ;;  %v110_v45 = vunpack.i.l.bf16 %v2497_v22  ;;  %v3125_v22 = vld [vmem:[#allocation2 + $0x3c0] ss:$16 sps:$4 sm:$0xff]  }
  0xba   :  { %1971 = vmatpush1.bf16.msra.mxu1 %v3041_v33  ;;  %1931 = vmatprep.subr.bf16.mxu0 %v3046_v34  ;;  %v3112_v32 = vld [vmem:[#allocation2 + $0x184] ss:$16 sps:$4 sm:$0xff]   ;;  %v3110_v34 = vld [vmem:[#allocation2 + $0x180] ss:$16 sps:$4 sm:$0xff]  }
  0xbb   :  { %1972 = vmatprep.subr.bf16.mxu1 %v3049_v35  ;;  %v115_v49 = vpack.c.bf16 %v3365_v58, %v110_v45  ;;  %v3067_v58 = vld [vmem:[#allocation2 + $0x284] ss:$16 sps:$4 sm:$0xff]   ;;  %v3113_v35 = vld [vmem:[#allocation2 + $0x380] ss:$16 sps:$4 sm:$0xff]  }
  0xbc   :  { %v3115_v33 = vld [vmem:[#allocation2 + $0x384] ss:$16 sps:$4 sm:$0xff]   ;;  %v3131_v45 = vld [vmem:[#allocation2 + $0x3e0] ss:$16 sps:$4 sm:$0xff]  }
  0xbd   :  { %1932 = vmatpush1.bf16.msra.mxu0 %v3044_v36  ;;  %117 = vst [vmem:[#allocation9 + $0x3] sm:$0x1] %v115_v49  ;;  %v3118_v36 = vld [vmem:[#allocation2 + $0x1a4] ss:$16 sps:$4 sm:$0xff]   ;;  %v3134_v49 = vld [vmem:[#allocation2 + $0x8] ss:$16 sps:$4 sm:$0xff]  }
  0xbe   :  { %1973 = vmatpush1.bf16.msra.mxu1 %v3047_v37  ;;  %1933 = vmatprep.subr.bf16.mxu0 %v3052_v26  ;;  %v3121_v37 = vld [vmem:[#allocation2 + $0x3a4] ss:$16 sps:$4 sm:$0xff]  }
  0xbf   :  { %1974 = vmatprep.subr.bf16.mxu1 %v3055_v43  ;;  %v3130_v26 = vld [vmem:[#allocation2 + $0x1e4] ss:$16 sps:$4 sm:$0xff]  }
  0xc0   :  { %v3133_v43 = vld [vmem:[#allocation2 + $0x3e4] ss:$16 sps:$4 sm:$0xff]  }
  0xc1   :  { %1934 = vmatpush1.bf16.msra.mxu0 %v3050_v50  ;;  %v3137_v50 = vld [vmem:[#allocation2 + $0x208] ss:$16 sps:$4 sm:$0xff]  }
  0xc2   :  { %1975 = vmatpush1.bf16.msra.mxu1 %v3053_v51  ;;  %1935 = vmatprep.subr.bf16.mxu0 %v3058_v52  ;;  %v3142_v52 = vld [vmem:[#allocation2 + $0x2c] ss:$16 sps:$4 sm:$0xff]  }
  0xc3   :  { %1976 = vmatprep.subr.bf16.mxu1 %v3061_v53  ;;  %v3145_v53 = vld [vmem:[#allocation2 + $0x22c] ss:$16 sps:$4 sm:$0xff]  }
  0xc4   :  { %v3500_v61 = vld.sshfl [vmem:[#allocation9] sm:$0x33 pattern:$0x75316420] }
  0xc5   :  { %1936 = vmatpush1.bf16.msra.mxu0 %v3056_v54  ;;  %v1268_v63 = vcombine.high %v3500_v61, %v3500_v61  ;;  %v3515_v46 = vrot.slane %v3500_v61, %v3470_v14  ;;  %v3143_v54 = vld [vmem:[#allocation2 + $0x228] ss:$16 sps:$4 sm:$0xff]  }
  0xc6   :  { %1977 = vmatpush1.bf16.msra.mxu1 %v3059_v55  ;;  %1937 = vmatprep.subr.bf16.mxu0 %v3064_v56  ;;  %v3148_v55 = vld [vmem:[#allocation2 + $0x4c] ss:$16 sps:$4 sm:$0xff]   ;;  %v3152_v61 = vld [vmem:[#allocation2 + $0x68] ss:$16 sps:$4 sm:$0xff]  }
  0xc7   :  { %1978 = vmatprep.subr.bf16.mxu1 %v3067_v58  ;;  %v3505_v2 = vrot.slane %v1268_v63, %v3470_v14  ;;  %v3519_v51 = vcombine.high %v3515_v46, %v3515_v46  ;;  %v3140_v14 = vld [vmem:[#allocation2 + $0x28] ss:$16 sps:$4 sm:$0xff]   ;;  %v3151_v56 = vld [vmem:[#allocation2 + $0x24c] ss:$16 sps:$4 sm:$0xff]  }
  0xc8   :  { %v3146_v58 = vld [vmem:[#allocation2 + $0x48] ss:$16 sps:$4 sm:$0xff]   ;;  %v3160_v63 = vld [vmem:[#allocation2 + $0x8c] ss:$16 sps:$4 sm:$0xff]  }
  0xc9   :  { %1938 = vmatpush1.bf16.msra.mxu0 %v3062_v57  ;;  %v3509_v5 = vcombine.high %v3505_v2, %v3505_v2  ;;  %1961 = vmatprep.mubr.bf16.mxu0 %v3505_v2  ;;  %v3149_v57 = vld [vmem:[#allocation2 + $0x248] ss:$16 sps:$4 sm:$0xff]  }
  0xca   :  { %1979 = vmatpush1.bf16.msra.mxu1 %v3065_v59  ;;  %1939 = vmatprep.subr.bf16.mxu0 %v3070_v60  ;;  %v3154_v59 = vld [vmem:[#allocation2 + $0x6c] ss:$16 sps:$4 sm:$0xff]  }
  0xcb   :  { %1980 = vmatprep.subr.bf16.mxu1 %v3073_v62  ;;  %2002 = vmatprep.mubr.bf16.mxu1 %v3509_v5  ;;  %v3157_v60 = vld [vmem:[#allocation2 + $0x26c] ss:$16 sps:$4 sm:$0xff]   ;;  %v3155_v62 = vld [vmem:[#allocation2 + $0x268] ss:$16 sps:$4 sm:$0xff]  }
  0xcd   :  { %1940 = vmatpush1.bf16.msra.mxu0 %v3068_v0  ;;  %v3163_v0 = vld [vmem:[#allocation2 + $0x28c] ss:$16 sps:$4 sm:$0xff]  }
  0xce   :  { %1981 = vmatpush1.bf16.msra.mxu1 %v3071_v1  ;;  %1941 = vmatprep.subr.bf16.mxu0 %v3076_v3  ;;  %v3158_v1 = vld [vmem:[#allocation2 + $0x88] ss:$16 sps:$4 sm:$0xff]   ;;  %v3166_v3 = vld [vmem:[#allocation2 + $0xac] ss:$16 sps:$4 sm:$0xff]  }
  0xcf   :  { %1982 = vmatprep.subr.bf16.mxu1 %v3079_v4  ;;  %v3169_v4 = vld [vmem:[#allocation2 + $0x2ac] ss:$16 sps:$4 sm:$0xff]  }
  0xd1   :  { %1942 = vmatpush1.bf16.msra.mxu0 %v3074_v6  ;;  %v3167_v6 = vld [vmem:[#allocation2 + $0x2a8] ss:$16 sps:$4 sm:$0xff]  }
  0xd2   :  { %1983 = vmatpush1.bf16.msra.mxu1 %v3077_v8  ;;  %1943 = vmatprep.subr.bf16.mxu0 %v3082_v9  ;;  %v3172_v8 = vld [vmem:[#allocation2 + $0xcc] ss:$16 sps:$4 sm:$0xff]  }
  0xd3   :  { %1984 = vmatprep.subr.bf16.mxu1 %v3085_v10  ;;  %v3175_v9 = vld [vmem:[#allocation2 + $0x2cc] ss:$16 sps:$4 sm:$0xff]   ;;  %v3170_v10 = vld [vmem:[#allocation2 + $0xc8] ss:$16 sps:$4 sm:$0xff]  }
  0xd5   :  { %1944 = vmatpush1.bf16.msra.mxu0 %v3080_v11  ;;  %v3173_v11 = vld [vmem:[#allocation2 + $0x2c8] ss:$16 sps:$4 sm:$0xff]  }
  0xd6   :  { %1985 = vmatpush1.bf16.msra.mxu1 %v3083_v12  ;;  %1945 = vmatprep.subr.bf16.mxu0 %v3088_v13  ;;  %v3178_v12 = vld [vmem:[#allocation2 + $0xec] ss:$16 sps:$4 sm:$0xff]  }
  0xd7   :  { %1986 = vmatprep.subr.bf16.mxu1 %v3091_v15  ;;  %v3181_v13 = vld [vmem:[#allocation2 + $0x2ec] ss:$16 sps:$4 sm:$0xff]   ;;  %v3176_v15 = vld [vmem:[#allocation2 + $0xe8] ss:$16 sps:$4 sm:$0xff]  }
  0xd9   :  { %1946 = vmatpush1.bf16.msra.mxu0 %v3086_v16  ;;  %v3179_v16 = vld [vmem:[#allocation2 + $0x2e8] ss:$16 sps:$4 sm:$0xff]  }
  0xda   :  { %1987 = vmatpush1.bf16.msra.mxu1 %v3089_v17  ;;  %1947 = vmatprep.subr.bf16.mxu0 %v3094_v18  ;;  %v3184_v17 = vld [vmem:[#allocation2 + $0x10c] ss:$16 sps:$4 sm:$0xff]  }
  0xdb   :  { %1988 = vmatprep.subr.bf16.mxu1 %v3097_v19  ;;  %v3187_v18 = vld [vmem:[#allocation2 + $0x30c] ss:$16 sps:$4 sm:$0xff]   ;;  %v3182_v19 = vld [vmem:[#allocation2 + $0x108] ss:$16 sps:$4 sm:$0xff]  }
  0xdd   :  { %1948 = vmatpush1.bf16.msra.mxu0 %v3092_v20  ;;  %v3185_v20 = vld [vmem:[#allocation2 + $0x308] ss:$16 sps:$4 sm:$0xff]  }
  0xde   :  { %1989 = vmatpush1.bf16.msra.mxu1 %v3095_v21  ;;  %1949 = vmatprep.subr.bf16.mxu0 %v3100_v23  ;;  %v3190_v21 = vld [vmem:[#allocation2 + $0x12c] ss:$16 sps:$4 sm:$0xff]  }
  0xdf   :  { %1990 = vmatprep.subr.bf16.mxu1 %v3103_v24  ;;  %v3193_v23 = vld [vmem:[#allocation2 + $0x32c] ss:$16 sps:$4 sm:$0xff]   ;;  %v3188_v24 = vld [vmem:[#allocation2 + $0x128] ss:$16 sps:$4 sm:$0xff]  }
  0xe1   :  { %1950 = vmatpush1.bf16.msra.mxu0 %v3098_v25  ;;  %v3191_v25 = vld [vmem:[#allocation2 + $0x328] ss:$16 sps:$4 sm:$0xff]  }
  0xe2   :  { %1991 = vmatpush1.bf16.msra.mxu1 %v3101_v27  ;;  %1951 = vmatprep.subr.bf16.mxu0 %v3106_v28  ;;  %v3196_v27 = vld [vmem:[#allocation2 + $0x14c] ss:$16 sps:$4 sm:$0xff]  }
  0xe3   :  { %1992 = vmatprep.subr.bf16.mxu1 %v3109_v29  ;;  %v3199_v28 = vld [vmem:[#allocation2 + $0x34c] ss:$16 sps:$4 sm:$0xff]   ;;  %v3194_v29 = vld [vmem:[#allocation2 + $0x148] ss:$16 sps:$4 sm:$0xff]  }
  0xe5   :  { %1952 = vmatpush1.bf16.msra.mxu0 %v3104_v30  ;;  %v3197_v30 = vld [vmem:[#allocation2 + $0x348] ss:$16 sps:$4 sm:$0xff]  }
  0xe6   :  { %1993 = vmatpush1.bf16.msra.mxu1 %v3107_v31  ;;  %1953 = vmatprep.subr.bf16.mxu0 %v3112_v32  ;;  %v3202_v31 = vld [vmem:[#allocation2 + $0x16c] ss:$16 sps:$4 sm:$0xff]  }
  0xe7   :  { %1994 = vmatprep.subr.bf16.mxu1 %v3115_v33  ;;  %v3205_v32 = vld [vmem:[#allocation2 + $0x36c] ss:$16 sps:$4 sm:$0xff]   ;;  %v3200_v33 = vld [vmem:[#allocation2 + $0x168] ss:$16 sps:$4 sm:$0xff]  }
  0xe9   :  { %1954 = vmatpush1.bf16.msra.mxu0 %v3110_v34  ;;  %v3203_v34 = vld [vmem:[#allocation2 + $0x368] ss:$16 sps:$4 sm:$0xff]  }
  0xea   :  { %1995 = vmatpush1.bf16.msra.mxu1 %v3113_v35  ;;  %1955 = vmatprep.subr.bf16.mxu0 %v3118_v36  ;;  %v3208_v35 = vld [vmem:[#allocation2 + $0x18c] ss:$16 sps:$4 sm:$0xff]  }
  0xeb   :  { %1996 = vmatprep.subr.bf16.mxu1 %v3121_v37  ;;  %v3211_v36 = vld [vmem:[#allocation2 + $0x38c] ss:$16 sps:$4 sm:$0xff]   ;;  %v3206_v37 = vld [vmem:[#allocation2 + $0x188] ss:$16 sps:$4 sm:$0xff]  }
  0xed   :  { %1956 = vmatpush1.bf16.msra.mxu0 %v3116_v38  ;;  %v3209_v38 = vld [vmem:[#allocation2 + $0x388] ss:$16 sps:$4 sm:$0xff]  }
  0xee   :  { %1997 = vmatpush1.bf16.msra.mxu1 %v3119_v39  ;;  %1957 = vmatprep.subr.bf16.mxu0 %v3124_v40  ;;  %v3214_v39 = vld [vmem:[#allocation2 + $0x1ac] ss:$16 sps:$4 sm:$0xff]  }
  0xef   :  { %1998 = vmatprep.subr.bf16.mxu1 %v3127_v41  ;;  %v3217_v40 = vld [vmem:[#allocation2 + $0x3ac] ss:$16 sps:$4 sm:$0xff]   ;;  %v3212_v41 = vld [vmem:[#allocation2 + $0x1a8] ss:$16 sps:$4 sm:$0xff]  }
  0xf1   :  { %1958 = vmatpush1.bf16.msra.mxu0 %v3122_v42  ;;  %v3215_v42 = vld [vmem:[#allocation2 + $0x3a8] ss:$16 sps:$4 sm:$0xff]  }
  0xf2   :  { %1999 = vmatpush1.bf16.msra.mxu1 %v3125_v22  ;;  %1959 = vmatprep.subr.bf16.mxu0 %v3130_v26  ;;  %v3220_v22 = vld [vmem:[#allocation2 + $0x1cc] ss:$16 sps:$4 sm:$0xff]  }
  0xf3   :  { %2000 = vmatprep.subr.bf16.mxu1 %v3133_v43  ;;  %v3223_v26 = vld [vmem:[#allocation2 + $0x3cc] ss:$16 sps:$4 sm:$0xff]   ;;  %v3218_v43 = vld [vmem:[#allocation2 + $0x1c8] ss:$16 sps:$4 sm:$0xff]  }
  0xf5   :  { %1960 = vmatpush1.bf16.msra.mxu0 %v3128_v44  ;;  %v3221_v44 = vld [vmem:[#allocation2 + $0x3c8] ss:$16 sps:$4 sm:$0xff]  }
  0xf6   :  { %2001 = vmatpush1.bf16.msra.mxu1 %v3131_v45  ;;  %2011 = vmatprep.subr.bf16.mxu0 %v3136_v47  ;;  %v3226_v45 = vld [vmem:[#allocation2 + $0x1ec] ss:$16 sps:$4 sm:$0xff]  }
  0xf7   :  { %2052 = vmatprep.subr.bf16.mxu1 %v3139_v48  ;;  %v3229_v47 = vld [vmem:[#allocation2 + $0x3ec] ss:$16 sps:$4 sm:$0xff]   ;;  %v3224_v48 = vld [vmem:[#allocation2 + $0x1e8] ss:$16 sps:$4 sm:$0xff]  }
  0xf8   :  { %1962 = vmatmul.mubr.bf16.vlgmr.msra.gmra.mrb[8].mxu0 %v3515_v46 }
  0xf9   :  { %2003 = vmatmul.mubr.bf16.vlgmr.msra.gmra.mrb[8].mxu1 %v3519_v51  ;;  %2012 = vmatpush1.bf16.msra.mxu0 %v3134_v49  ;;  %v3227_v49 = vld [vmem:[#allocation2 + $0x3e8] ss:$16 sps:$4 sm:$0xff]  }
  0xfa   :  { %2053 = vmatpush1.bf16.msra.mxu1 %v3137_v50  ;;  %2013 = vmatprep.subr.bf16.mxu0 %v3142_v52  ;;  %v3230_v50 = vld [vmem:[#allocation7 + $0x40] sm:$0xff]  }
  0xfb   :  { %2054 = vmatprep.subr.bf16.mxu1 %v3145_v53  ;;  %2043 = vmatprep.mubr.bf16.mxu0 %v3505_v2  ;;  %v3161_v2 = vld [vmem:[#allocation2 + $0x288] ss:$16 sps:$4 sm:$0xff]   ;;  %v3231_v52 = vld [vmem:[#allocation7] sm:$0xff]  }
  0xfc   :  { %2084 = vmatprep.mubr.bf16.mxu1 %v3509_v5  ;;  %v3164_v5 = vld [vmem:[#allocation2 + $0xa8] ss:$16 sps:$4 sm:$0xff]  }
  0xfd   :  { %2014 = vmatpush1.bf16.msra.mxu0 %v3140_v14  ;;  %v3232_v53 = vld [vmem:[#allocation7 + $0x48] sm:$0xff]  }
  0xfe   :  { %2055 = vmatpush1.bf16.msra.mxu1 %v3143_v54  ;;  %2015 = vmatprep.subr.bf16.mxu0 %v3148_v55  ;;  %v3233_v14 = vld [vmem:[#allocation7 + $0x8] sm:$0xff]   ;;  %v3234_v54 = vld [vmem:[#allocation7 + $0x50] sm:$0xff]  }
  0xff   :  { %2056 = vmatprep.subr.bf16.mxu1 %v3151_v56  ;;  %v3235_v55 = vld [vmem:[#allocation7 + $0x10] sm:$0xff]   ;;  %v3236_v56 = vld [vmem:[#allocation7 + $0x58] sm:$0xff]  }
 0x101   :  { %2016 = vmatpush1.bf16.msra.mxu0 %v3146_v58  ;;  %v3237_v58 = vld [vmem:[#allocation7 + $0x18] sm:$0xff]  }
 0x102   :  { %2057 = vmatpush1.bf16.msra.mxu1 %v3149_v57  ;;  %2017 = vmatprep.subr.bf16.mxu0 %v3154_v59  ;;  %v3238_v57 = vld [vmem:[#allocation7 + $0x60] sm:$0xff]  }
 0x103   :  { %2058 = vmatprep.subr.bf16.mxu1 %v3157_v60  ;;  %v3239_v59 = vld [vmem:[#allocation7 + $0x20] sm:$0xff]   ;;  %v3240_v60 = vld [vmem:[#allocation7 + $0x68] sm:$0xff]  }
 0x105   :  { %2018 = vmatpush1.bf16.msra.mxu0 %v3152_v61 }
 0x106   :  { %2059 = vmatpush1.bf16.msra.mxu1 %v3155_v62  ;;  %2019 = vmatprep.subr.bf16.mxu0 %v3160_v63 }
 0x107   :  { %2060 = vmatprep.subr.bf16.mxu1 %v3163_v0 }
 0x109   :  { %2020 = vmatpush1.bf16.msra.mxu0 %v3158_v1 }
 0x10a   :  { %2061 = vmatpush1.bf16.msra.mxu1 %v3161_v2  ;;  %2021 = vmatprep.subr.bf16.mxu0 %v3166_v3 }
 0x10b   :  { %2062 = vmatprep.subr.bf16.mxu1 %v3169_v4 }
 0x10d   :  { %2022 = vmatpush1.bf16.msra.mxu0 %v3164_v5 }
 0x10e   :  { %2063 = vmatpush1.bf16.msra.mxu1 %v3167_v6  ;;  %2023 = vmatprep.subr.bf16.mxu0 %v3172_v8  ;;  %v3242_v6 = vld [vmem:[#allocation7 + $0x70] sm:$0xff]  }
 0x10f   :  { %2064 = vmatprep.subr.bf16.mxu1 %v3175_v9  ;;  %v3243_v8 = vld [vmem:[#allocation7 + $0x30] sm:$0xff]   ;;  %v3244_v9 = vld [vmem:[#allocation7 + $0x78] sm:$0xff]  }
 0x111   :  { %2024 = vmatpush1.bf16.msra.mxu0 %v3170_v10  ;;  %v3245_v10 = vld [vmem:[#allocation7 + $0x38] sm:$0xff]  }
 0x112   :  { %2065 = vmatpush1.bf16.msra.mxu1 %v3173_v11  ;;  %2025 = vmatprep.subr.bf16.mxu0 %v3178_v12  ;;  %v3246_v11 = vld [vmem:[#allocation7 + $0xc0] sm:$0xff]  }
 0x113   :  { %2066 = vmatprep.subr.bf16.mxu1 %v3181_v13  ;;  %v3247_v12 = vld [vmem:[#allocation7 + $0x80] sm:$0xff]   ;;  %v3248_v13 = vld [vmem:[#allocation7 + $0xc8] sm:$0xff]  }
 0x115   :  { %2026 = vmatpush1.bf16.msra.mxu0 %v3176_v15  ;;  %v3249_v15 = vld [vmem:[#allocation7 + $0x88] sm:$0xff]  }
 0x116   :  { %2067 = vmatpush1.bf16.msra.mxu1 %v3179_v16  ;;  %2027 = vmatprep.subr.bf16.mxu0 %v3184_v17  ;;  %v3250_v16 = vld [vmem:[#allocation7 + $0xd0] sm:$0xff]  }
 0x117   :  { %2068 = vmatprep.subr.bf16.mxu1 %v3187_v18  ;;  %v3251_v17 = vld [vmem:[#allocation7 + $0x90] sm:$0xff]   ;;  %v3252_v18 = vld [vmem:[#allocation7 + $0xd8] sm:$0xff]  }
 0x119   :  { %2028 = vmatpush1.bf16.msra.mxu0 %v3182_v19  ;;  %v3253_v19 = vld [vmem:[#allocation7 + $0x98] sm:$0xff]  }
 0x11a   :  { %2069 = vmatpush1.bf16.msra.mxu1 %v3185_v20  ;;  %2029 = vmatprep.subr.bf16.mxu0 %v3190_v21  ;;  %v3254_v20 = vld [vmem:[#allocation7 + $0xe0] sm:$0xff]  }
 0x11b   :  { %2070 = vmatprep.subr.bf16.mxu1 %v3193_v23  ;;  %v3255_v21 = vld [vmem:[#allocation7 + $0xa0] sm:$0xff]   ;;  %v3256_v23 = vld [vmem:[#allocation7 + $0xe8] sm:$0xff]  }
 0x11d   :  { %2030 = vmatpush1.bf16.msra.mxu0 %v3188_v24 }
 0x11e   :  { %2071 = vmatpush1.bf16.msra.mxu1 %v3191_v25  ;;  %2031 = vmatprep.subr.bf16.mxu0 %v3196_v27  ;;  %v3257_v27 = vld [vmem:[#allocation7 + $0xa8] sm:$0xff]  }
 0x11f   :  { %2072 = vmatprep.subr.bf16.mxu1 %v3199_v28 }
 0x121   :  { %2032 = vmatpush1.bf16.msra.mxu0 %v3194_v29 }
 0x122   :  { %2073 = vmatpush1.bf16.msra.mxu1 %v3197_v30  ;;  %2033 = vmatprep.subr.bf16.mxu0 %v3202_v31 }
 0x123   :  { %2074 = vmatprep.subr.bf16.mxu1 %v3205_v32 }
 0x125   :  { %2034 = vmatpush1.bf16.msra.mxu0 %v3200_v33 }
 0x126   :  { %2075 = vmatpush1.bf16.msra.mxu1 %v3203_v34  ;;  %2035 = vmatprep.subr.bf16.mxu0 %v3208_v35 }
 0x127   :  { %2076 = vmatprep.subr.bf16.mxu1 %v3211_v36  ;;  %v3258_v36 = vld [vmem:[#allocation7 + $0xf0] sm:$0xff]  }
 0x129   :  { %2036 = vmatpush1.bf16.msra.mxu0 %v3206_v37  ;;  %v3259_v37 = vld [vmem:[#allocation7 + $0xb0] sm:$0xff]  }
 0x12a   :  { %2077 = vmatpush1.bf16.msra.mxu1 %v3209_v38  ;;  %2037 = vmatprep.subr.bf16.mxu0 %v3214_v39  ;;  %v3260_v38 = vld [vmem:[#allocation7 + $0xf8] sm:$0xff]  }
 0x12b   :  { %2078 = vmatprep.subr.bf16.mxu1 %v3217_v40  ;;  %v3261_v39 = vld [vmem:[#allocation7 + $0xb8] sm:$0xff]   ;;  %v2097_v40 = vsub.s32 0, %v3467_v7 }
 0x12d   :  { %2038 = vmatpush1.bf16.msra.mxu0 %v3212_v41  ;;  %v2093_v41 = vld [vmem:[%s3557_s2] sm:$0xf] }
 0x12e   :  { %2079 = vmatpush1.bf16.msra.mxu1 %v3215_v42  ;;  %2039 = vmatprep.subr.bf16.mxu0 %v3220_v22  ;;  %v2101_v42 = vsub.s32 1, %v3467_v7 }
 0x12f   :  { %2080 = vmatprep.subr.bf16.mxu1 %v3223_v26 }
 0x131   :  { %2040 = vmatpush1.bf16.msra.mxu0 %v3218_v43 }
 0x132   :  { %2081 = vmatpush1.bf16.msra.mxu1 %v3221_v44  ;;  %2041 = vmatprep.subr.bf16.mxu0 %v3226_v45  ;;  %v2098_v44 = vrot.slane %v2093_v41, %v2097_v40 }
 0x133   :  { %2082 = vmatprep.subr.bf16.mxu1 %v3229_v47 }
 0x135   :  { %2042 = vmatpush1.bf16.msra.mxu0 %v3224_v48 }
 0x136   :  { %2083 = vmatpush1.bf16.msra.mxu1 %v3227_v49  ;;  %2792 = vmatprep.subr.bf16.mxu0 %v3230_v50  ;;  %v2102_v49 = vrot.slane %v2093_v41, %v2101_v42 }
 0x137   :  { %2814 = vmatprep.subr.bf16.mxu1 %v3246_v11 }
 0x138   :  { %2044 = vmatmul.mubr.bf16.vlgmr.msra.gmra.mrb[12].mxu0 %v3515_v46 }
 0x139   :  { %2085 = vmatmul.mubr.bf16.vlgmr.msra.gmra.mrb[12].mxu1 %v3519_v51  ;;  %2793 = vmatpush3.bf16.msra.mxu0 %v3231_v52  ;;  %v3241_v51 = vld [vmem:[#allocation7 + $0x28] sm:$0xff]  }
 0x13a   :  { %2794 = vmatprep.subr.bf16.mxu0 %v3232_v53  ;;  %2815 = vmatpush3.bf16.msra.mxu1 %v3247_v12 }
 0x13b   :  { %2816 = vmatprep.subr.bf16.mxu1 %v3248_v13 }
 0x13d   :  { %2795 = vmatpush3.bf16.msra.mxu0 %v3233_v14 }
 0x13e   :  { %2796 = vmatprep.subr.bf16.mxu0 %v3234_v54  ;;  %2817 = vmatpush3.bf16.msra.mxu1 %v3249_v15 }
 0x13f   :  { %2818 = vmatprep.subr.bf16.mxu1 %v3250_v16 }
 0x141   :  { %2797 = vmatpush3.bf16.msra.mxu0 %v3235_v55 }
 0x142   :  { %2798 = vmatprep.subr.bf16.mxu0 %v3236_v56  ;;  %2819 = vmatpush3.bf16.msra.mxu1 %v3251_v17 }
 0x143   :  { %2820 = vmatprep.subr.bf16.mxu1 %v3252_v18 }
 0x145   :  { %2799 = vmatpush3.bf16.msra.mxu0 %v3237_v58 }
 0x146   :  { %2800 = vmatprep.subr.bf16.mxu0 %v3238_v57  ;;  %2821 = vmatpush3.bf16.msra.mxu1 %v3253_v19 }
 0x147   :  { %2822 = vmatprep.subr.bf16.mxu1 %v3254_v20 }
 0x149   :  { %2801 = vmatpush3.bf16.msra.mxu0 %v3239_v59 }
 0x14a   :  { %2802 = vmatprep.subr.bf16.mxu0 %v3240_v60  ;;  %2823 = vmatpush3.bf16.msra.mxu1 %v3255_v21 }
 0x14b   :  { %v1130_v46 = vpop.f32.mrb[0].mxu0  ;;  %2824 = vmatprep.subr.bf16.mxu1 %v3256_v23 }
 0x14c   :  { %v1171_v61 = vpop.f32.mrb[0].mxu1  ;;  %v1132_v63 = vpop.f32.mrb[1].mxu0 }
 0x14d   :  { %v3527_v62 = vadd.f32 %v1171_v61, %v1130_v46  ;;  %v1173_v0 = vpop.f32.mrb[1].mxu1  ;;  %v1134_v2 = vpop.f32.mrb[2].mxu0  ;;  %2803 = vmatpush3.bf16.msra.mxu0 %v3241_v51  ;;  %v2105_v61 = vsub.s32 2, %v3467_v7  ;;  %v2109_v51 = vsub.s32 3, %v3467_v7 }
 0x14e   :  { %v3529_v1 = vadd.f32 %v1173_v0, %v1132_v63  ;;  %v1175_v3 = vpop.f32.mrb[2].mxu1  ;;  %v1135_v4 = vpop.f32.mrb[3].mxu0  ;;  %2804 = vmatprep.subr.bf16.mxu0 %v3242_v6  ;;  %2825 = vmatpush3.bf16.msra.mxu1 %v3257_v27 }
 0x14f   :  { %v1176_v5 = vpop.f32.mrb[3].mxu1  ;;  %2826 = vmatprep.subr.bf16.mxu1 %v3258_v36 }
 0x150   :  { %v2110_v5 = vrot.slane %v2093_v41, %v2109_v51 }
 0x151   :  { %2805 = vmatpush3.bf16.msra.mxu0 %v3243_v8 }
 0x152   :  { %2806 = vmatprep.subr.bf16.mxu0 %v3244_v9  ;;  %2827 = vmatpush3.bf16.msra.mxu1 %v3259_v37 }
 0x153   :  { %2828 = vmatprep.subr.bf16.mxu1 %v3260_v38 }
 0x155   :  { %2807 = vmatpush3.bf16.msra.mxu0 %v3245_v10 }
 0x156   :  { %2829 = vmatpush3.bf16.msra.mxu1 %v3261_v39 }
 0x18b   :  { %v1212_v24 = vpop.f32.mrb[4].mxu0 }
 0x18c   :  { %v1253_v25 = vpop.f32.mrb[4].mxu1  ;;  %v1214_v29 = vpop.f32.mrb[5].mxu0 }
 0x18d   :  { %v1254_v28 = vadd.f32 %v1253_v25, %v1212_v24  ;;  %v1255_v30 = vpop.f32.mrb[5].mxu1  ;;  %v1216_v32 = vpop.f32.mrb[6].mxu0  ;;  %v2759_v25 = vld [vmem:[%s3559_s4] ss:$0 sm:$0xff]  ;;  %s3330_s4 = scalar_lea.vmem %s2486_s10, 32 }
 0x18e   :  { %v1256_v31 = vadd.f32 %v1255_v30, %v1214_v29  ;;  %v1257_v33 = vpop.f32.mrb[6].mxu1  ;;  %v1217_v34 = vpop.f32.mrb[7].mxu0  ;;  %p3331_p10 = scmp.ne.s32.totalorder %s2486_s10, %s3330_s4  ;;  %p3336_p12 = scmp.lt.s32.totalorder %s3330_s4, %s3330_s4 }
 0x18f   :  { %v1258_v35 = vpop.f32.mrb[7].mxu1 }
 0x190   :  { %p3337_p13 = por %p3336_p12, %p3335_p11 }
 0x192   :  { %p3338_p0 = pnand %p3337_p13, %p3331_p10 }
 0x1cb   :  { %v1963_v22 = vpop.f32.mrb[8].mxu0 }
 0x1cc   :  { %v2004_v26 = vpop.f32.mrb[8].mxu1  ;;  %v1964_v43 = vadd.f32 %v1963_v22, %v3527_v62  ;;  %v1965_v45 = vpop.f32.mrb[9].mxu0 }
 0x1cd   :  { %v2006_v47 = vpop.f32.mrb[9].mxu1  ;;  %v1966_v48 = vadd.f32 %v1965_v45, %v3529_v1  ;;  %v1967_v50 = vpop.f32.mrb[10].mxu0  ;;  %v2106_v1 = vrot.slane %v2093_v41, %v2105_v61 }
 0x1ce   :  { %v2008_v52 = vpop.f32.mrb[10].mxu1  ;;  %v2005_v53 = vadd.f32 %v2004_v26, %v1964_v43  ;;  %v1968_v14 = vpop.f32.mrb[11].mxu0 }
 0x1cf   :  { %v2009_v54 = vpop.f32.mrb[11].mxu1  ;;  %v2007_v55 = vadd.f32 %v2006_v47, %v1966_v48 }
 0x1d0   :  { %v2115_v56 = vadd.f32 %v2098_v44, %v2005_v53 }
 0x1d1   :  { %v2116_v58 = vadd.f32 %v2102_v49, %v2007_v55 }
 0x1d2   :  { %v2119_v57 = vmax.f32 %v2115_v56, 0.0 }
 0x1d3   :  { %v2120_v59 = vmax.f32 %v2116_v58, 0.0 }
 0x1d4   :  { %v2123_v46 = vpack.c.bf16 %v2119_v57, %v2119_v57 }
 0x1d5   :  { %v2124_v60 = vpack.c.bf16 %v2120_v59, %v2120_v59 }
 0x1d7   :  { %2422 = vmatprep.mubr.bf16.mxu0 %v2124_v60 }
 0x1d8   :  { %2423 = vmatmul.mubr.bf16.vlgmr.msra.gmra.mrb[16].mxu0 %v2123_v46 }
 0x20b   :  { %v2045_v62 = vpop.f32.mrb[12].mxu0 }
 0x20c   :  { %v2086_v63 = vpop.f32.mrb[12].mxu1  ;;  %v2046_v0 = vadd.f32 %v2045_v62, %v1254_v28  ;;  %v2047_v2 = vpop.f32.mrb[13].mxu0 }
 0x20d   :  { %v2088_v3 = vpop.f32.mrb[13].mxu1  ;;  %v2048_v4 = vadd.f32 %v2047_v2, %v1256_v31  ;;  %v2049_v6 = vpop.f32.mrb[14].mxu0 }
 0x20e   :  { %v2090_v8 = vpop.f32.mrb[14].mxu1  ;;  %v2087_v9 = vadd.f32 %v2086_v63, %v2046_v0  ;;  %v2050_v10 = vpop.f32.mrb[15].mxu0 }
 0x20f   :  { %v2091_v11 = vpop.f32.mrb[15].mxu1  ;;  %v2089_v12 = vadd.f32 %v2088_v3, %v2048_v4 }
 0x210   :  { %v2117_v13 = vadd.f32 %v2106_v1, %v2087_v9 }
 0x211   :  { %v2118_v15 = vadd.f32 %v2110_v5, %v2089_v12 }
 0x212   :  { %v2121_v16 = vmax.f32 %v2117_v13, 0.0 }
 0x213   :  { %v2122_v17 = vmax.f32 %v2118_v15, 0.0 }
 0x214   :  { %v2125_v7 = vpack.c.bf16 %v2121_v16, %v2121_v16 }
 0x215   :  { %v2126_v18 = vpack.c.bf16 %v2122_v17, %v2122_v17 }
 0x217   :  { %2462 = vmatprep.mubr.bf16.mxu1 %v2126_v18 }
 0x218   :  { %2463 = vmatmul.mubr.bf16.vlgmr.msra.gmra.mrb[16].mxu1 %v2125_v7 }
 0x2ab   :  { %v2808_v19 = vpop.f32.mrb[16].mxu0 }
 0x2ac   :  { %v2809_v20 = vpop.f32.mrb[17].mxu0 }
 0x2ad   :  { %v2810_v21 = vadd.f32 %v2809_v20, %v2808_v19  ;;  %v2811_v23 = vpop.f32.mrb[18].mxu0 }
 0x2ae   :  { %v2812_v24 = vpop.f32.mrb[19].mxu0 }
 0x2af   :  { %v2425_v29 = vadd.f32 %v2810_v21, %v2759_v25 }
 0x2eb   :  { %v2830_v27 = vpop.f32.mrb[16].mxu1 }
 0x2ec   :  { %v2831_v28 = vpop.f32.mrb[17].mxu1 }
 0x2ed   :  { %v2832_v30 = vadd.f32 %v2831_v28, %v2830_v27  ;;  %v2833_v31 = vpop.f32.mrb[18].mxu1 }
 0x2ee   :  { %v2834_v32 = vpop.f32.mrb[19].mxu1 }
 0x2ef   :  { %v2465_v33 = vadd.f32 %v2832_v30, %v2425_v29 }
 0x2f1   :  { %v2470_v34 = vmax.f32 %v2465_v33, 0.0 }
 0x2f3   :  { %v2472_v35 = vsel %vm2471_vm0, %v2470_v34, 0.0 }
 0x2f4   :  { %2473 = vadd.xlane.f32.xlu0 %v2472_v35 }
 0x381   :  { %v2474_v36 = vpop.xlane.xlu0 %2473 }
 0x382   :  { %v2475_v37 = vadd.f32 1e-12, %v2474_v36 }
 0x384   :  { %3262 = vrcp.f32 %v2475_v37 }
 0x38e   :  { %v3263_v38 = vpop.eup %3262 }
 0x38f   :  { %v2477_v39 = vmul.f32 %v3263_v38, %v2470_v34 }
 0x391   :  { %2478 = vst [vmem:[#allocation8] sm:$0x3] %v2477_v39 }
 0x392   :  { %3341 = shalt.err (!%p3338_p0)
}
 0x393   :  { %s3342_s15 = scalar_lea.hbm %s3562_s7, 32 }
 0x394   :  { %p3343_p1 = scmp.ne.s32.totalorder %s3562_s7, %s3342_s15  ;;  %p3346_p2 = scmp.lt.u32.totalorder %s3342_s15, %s3562_s7 }
 0x396   :  { %p3348_p3 = pnand %p3346_p2, %p3343_p1 }
 0x398   :  { %3351 = shalt.err (!%p3348_p3)
}
 0x399   :  { %2488 = dma.vmem_to_hbm [thread:$0]  %s2486_s10, 32, %s3562_s7, [#allocation4]  }
 0x39a   :  { %3356 = dma.done.wait [#allocation4], 32  }
 0x39b   :  { %3357 = vsyncadd [#allocation4], 4294967264 }
 0x39c   :  { %2492 = vsyncpa [#allocation3], 1 }
 0x39d   :  { %2493 = vsyncpa [#allocation6], 1 }
 0x39e   :  { %2494 = vsyncpa [#allocation4], 1 }

</bundles_post_ra>
